<compile_context>
chip_gen: v5e
topology: v5e:2x2
jax: 0.10.0
libtpu: 0.0.40
codegen_flags: <defaults>
</compile_context>

<pallas_src>
from functools import partial

import jax
import jax.numpy as jnp
import numpy as np
from jax.experimental import pallas as pl
from jax.experimental.pallas import tpu as pltpu

HIDDEN = 128
SUBLANE_PAD = 16   # bf16 sublane pack factor; also a multiple of the f32 pack (8)
LANE_PAD = 128     # lane width for the fc-head output


def _lstm_kernel(x_ref, wih_ref, whh_ref, b_ref, wfc_ref, bfc_ref,
                 out_ref, gx_ref):
    # x_ref:   (T*Bp, D)  bf16, time-major, batch padded to Bp
    # wih_ref: (D, 4H)    bf16      whh_ref: (H, 4H) bf16
    # b_ref:   (1, 4H)    f32       (b_ih + b_hh folded)
    # wfc_ref: (H, 128)   bf16      (w_fc^T zero-padded on lanes)
    # bfc_ref: (1, 128)   f32       (b_fc zero-padded on lanes)
    # out_ref: (Bp, 128)  f32       logits (lane-dense)
    # gx_ref:  (T*Bp, 4H) f32       VMEM scratch for the hoisted input projection
    TB, _ = x_ref.shape
    H = whh_ref.shape[0]
    Bp = out_ref.shape[0]
    T = TB // Bp

    # Hoisted input projection + bias for ALL timesteps, staged in VMEM scratch
    # (not kept as a long-lived vreg value).
    gx_ref[...] = (
        jnp.dot(x_ref[...], wih_ref[...], preferred_element_type=jnp.float32)
        + b_ref[...]
    )

    h = jnp.zeros((Bp, H), jnp.float32)
    c = jnp.zeros((Bp, H), jnp.float32)

    # T is small & static -> fully unrolled recurrence.  Only h @ W_hh (bf16 MXU)
    # and the gate nonlinearities (EUP tanh) sit on the serial critical path.
    for t in range(T):
        gates = gx_ref[t * Bp:(t + 1) * Bp, :] + jnp.dot(
            h.astype(jnp.bfloat16), whh_ref[...],
            preferred_element_type=jnp.float32)           # (Bp, 4H) f32
        # sigmoid(x) = 0.5*(tanh(0.5*x)+1): single EUP op per gate; the extra
        # fma rides the VPU slot which has slack.
        i_g = 0.5 * (jnp.tanh(0.5 * gates[:, 0 * H:1 * H]) + 1.0)
        f_g = 0.5 * (jnp.tanh(0.5 * gates[:, 1 * H:2 * H]) + 1.0)
        g_g = jnp.tanh(gates[:, 2 * H:3 * H])
        o_g = 0.5 * (jnp.tanh(0.5 * gates[:, 3 * H:4 * H]) + 1.0)
        c = f_g * c + i_g * g_g
        h = o_g * jnp.tanh(c)

    # Fused fc head: lane-padded (H, 128) weight -> (Bp, 128) unmasked store.
    out_ref[...] = (
        jnp.dot(h.astype(jnp.bfloat16), wfc_ref[...],
                preferred_element_type=jnp.float32)
        + bfc_ref[...]
    )


def prepare_params(w_ih, w_hh, b_ih, b_hh, w_fc, b_fc):
    """One-time weight prep (outside the per-call hot path)."""
    H = w_hh.shape[1]
    C = w_fc.shape[0]
    wih_t = jnp.transpose(w_ih).astype(jnp.bfloat16)          # (D, 4H)
    whh_t = jnp.transpose(w_hh).astype(jnp.bfloat16)          # (H, 4H)
    b = (b_ih + b_hh).reshape(1, 4 * H).astype(jnp.float32)   # (1, 4H)
    wfc_pad = (jnp.zeros((H, LANE_PAD), jnp.float32)
               .at[:, :C].set(jnp.transpose(w_fc))
               .astype(jnp.bfloat16))                         # (H, 128)
    bfc_pad = (jnp.zeros((1, LANE_PAD), jnp.float32)
               .at[0, :C].set(b_fc))                          # (1, 128)
    return (wih_t, whh_t, b, wfc_pad, bfc_pad)


@partial(jax.jit, static_argnames=("num_classes",))
def rnn_forward(x, params, *, num_classes):
    """x: (B, T, D) float32 (batch_first).  Returns (B, num_classes) float32."""
    wih_t, whh_t, b, wfc_pad, bfc_pad = params
    B, T, D = x.shape
    H = whh_t.shape[0]

    # Pad batch to the bf16 sublane pack factor so all matmul operands / stores
    # are tile-aligned and unmasked; padded rows are discarded after the call.
    Bp = ((B + SUBLANE_PAD - 1) // SUBLANE_PAD) * SUBLANE_PAD
    x_p = jnp.pad(x, ((0, Bp - B), (0, 0), (0, 0))) if Bp != B else x
    # Time-major flatten (pad + transpose + reshape fuse into one small copy) so
    # each timestep's gate block is a contiguous, sublane-aligned slice in-kernel.
    x_tm = jnp.transpose(x_p, (1, 0, 2)).reshape(T * Bp, D).astype(jnp.bfloat16)

    logits = pl.pallas_call(
        _lstm_kernel,
        out_shape=jax.ShapeDtypeStruct((Bp, LANE_PAD), jnp.float32),
        in_specs=[
            pl.BlockSpec(memory_space=pltpu.MemorySpace.VMEM),  # x (time-major, bf16)
            pl.BlockSpec(memory_space=pltpu.MemorySpace.VMEM),  # W_ih^T (bf16)
            pl.BlockSpec(memory_space=pltpu.MemorySpace.VMEM),  # W_hh^T (bf16)
            pl.BlockSpec(memory_space=pltpu.MemorySpace.VMEM),  # bias (f32)
            pl.BlockSpec(memory_space=pltpu.MemorySpace.VMEM),  # w_fc^T padded (bf16)
            pl.BlockSpec(memory_space=pltpu.MemorySpace.VMEM),  # b_fc padded (f32)
        ],
        out_specs=pl.BlockSpec(memory_space=pltpu.MemorySpace.VMEM),
        scratch_shapes=[pltpu.VMEM((T * Bp, 4 * H), jnp.float32)],  # gx staging
    )(x_tm, wih_t, whh_t, b, wfc_pad, bfc_pad)

    return logits[:B, :num_classes]


def rnn_forward_ref(x, w_ih, w_hh, b_ih, b_hh, w_fc, b_fc):
    """Pure-JAX f32 reference matching PyTorch nn.LSTM + nn.Linear semantics."""
    B, T, D = x.shape
    H = w_hh.shape[1]
    h = jnp.zeros((B, H), jnp.float32)
    c = jnp.zeros((B, H), jnp.float32)
    for t in range(T):
        gates = x[:, t, :] @ w_ih.T + b_ih + h @ w_hh.T + b_hh
        i = jax.nn.sigmoid(gates[:, 0 * H:1 * H])
        f = jax.nn.sigmoid(gates[:, 1 * H:2 * H])
        g = jnp.tanh(gates[:, 2 * H:3 * H])
        o = jax.nn.sigmoid(gates[:, 3 * H:4 * H])
        c = f * c + i * g
        h = o * jnp.tanh(c)
    return h @ w_fc.T + b_fc


if __name__ == "__main__":
    B, T, D = 2, 8, 32          # batch, seq, input_size
    H = HIDDEN                  # 128
    C = 10                      # num_classes

    key = jax.random.PRNGKey(0)
    ks = jax.random.split(key, 7)
    bound = 1.0 / np.sqrt(H)    # PyTorch default LSTM init range

    x = jax.random.normal(ks[0], (B, T, D), jnp.float32)
    w_ih = jax.random.uniform(ks[1], (4 * H, D), jnp.float32, -bound, bound)
    w_hh = jax.random.uniform(ks[2], (4 * H, H), jnp.float32, -bound, bound)
    b_ih = jax.random.uniform(ks[3], (4 * H,), jnp.float32, -bound, bound)
    b_hh = jax.random.uniform(ks[4], (4 * H,), jnp.float32, -bound, bound)
    w_fc = jax.random.uniform(ks[5], (C, H), jnp.float32, -bound, bound)
    b_fc = jax.random.uniform(ks[6], (C,), jnp.float32, -bound, bound)

    params = prepare_params(w_ih, w_hh, b_ih, b_hh, w_fc, b_fc)
    out = rnn_forward(x, params, num_classes=C)
    jax.block_until_ready(out)

    ref = rnn_forward_ref(x, w_ih, w_hh, b_ih, b_hh, w_fc, b_fc)
    # bf16 MXU operands (f32 accumulation) vs. pure-f32 reference across an
    # 8-step recurrence: loosen tolerance accordingly.
    np.testing.assert_allclose(np.asarray(out), np.asarray(ref),
                               rtol=2e-2, atol=2e-2)

    print("KERNEL_OK")
</pallas_src>

<mosaic_0001>
module attributes {stable_mosaic.version = 11 : i64} {
  func.func @_lstm_kernel(%arg0: memref<128x32xbf16, #tpu.memory_space<vmem>>, %arg1: memref<32x512xbf16, #tpu.memory_space<vmem>>, %arg2: memref<128x512xbf16, #tpu.memory_space<vmem>>, %arg3: memref<1x512xf32, #tpu.memory_space<vmem>>, %arg4: memref<128x128xbf16, #tpu.memory_space<vmem>>, %arg5: memref<1x128xf32, #tpu.memory_space<vmem>>, %arg6: memref<16x128xf32, #tpu.memory_space<vmem>>, %arg7: memref<128x512xf32, #tpu.memory_space<vmem>>) attributes {dimension_semantics = [], scalar_prefetch = 0 : i64, scratch_operands = 1 : i64, tpu.core_type = #tpu.core_type<tc>} {
    %c0 = arith.constant 0 : index
    %c0_0 = arith.constant 0 : index
    %0 = vector.load %arg0[%c0, %c0_0] : memref<128x32xbf16, #tpu.memory_space<vmem>>, vector<128x32xbf16>
    %c0_1 = arith.constant 0 : index
    %c0_2 = arith.constant 0 : index
    %1 = vector.load %arg1[%c0_1, %c0_2] : memref<32x512xbf16, #tpu.memory_space<vmem>>, vector<32x512xbf16>
    %cst = arith.constant dense<0.000000e+00> : vector<128x512xf32>
    %2 = tpu.matmul %0, %1, %cst {dimension_numbers = #tpu.dot_dimension_numbers<[1], [0], [0], [1], [0, 0, 1, 1], [], []>} : vector<128x32xbf16>, vector<32x512xbf16>, vector<128x512xf32> -> vector<128x512xf32>
    %c0_3 = arith.constant 0 : index
    %c0_4 = arith.constant 0 : index
    %3 = vector.load %arg3[%c0_3, %c0_4] : memref<1x512xf32, #tpu.memory_space<vmem>>, vector<1x512xf32>
    %4 = vector.broadcast %3 : vector<1x512xf32> to vector<128x512xf32>
    %5 = arith.addf %2, %4 : vector<128x512xf32>
    %c0_5 = arith.constant 0 : index
    %c0_6 = arith.constant 0 : index
    %6 = vector.load %arg7[%c0_5, %c0_6] : memref<128x512xf32, #tpu.memory_space<vmem>>, vector<128x512xf32>
    tpu.vector_store %arg7[%c0_5, %c0_6], %5 {strides = array<i32>} : memref<128x512xf32, #tpu.memory_space<vmem>>, vector<128x512xf32>,
    %cst_7 = arith.constant 0.000000e+00 : f32
    %7 = vector.broadcast %cst_7 : f32 to vector<16x128xf32>
    %cst_8 = arith.constant 0.000000e+00 : f32
    %8 = vector.broadcast %cst_8 : f32 to vector<16x128xf32>
    %c0_9 = arith.constant 0 : index
    %c0_10 = arith.constant 0 : index
    %9 = vector.load %arg7[%c0_9, %c0_10] : memref<128x512xf32, #tpu.memory_space<vmem>>, vector<16x512xf32>
    %10 = arith.truncf %7 : vector<16x128xf32> to vector<16x128xbf16>
    %c0_11 = arith.constant 0 : index
    %c0_12 = arith.constant 0 : index
    %11 = vector.load %arg2[%c0_11, %c0_12] : memref<128x512xbf16, #tpu.memory_space<vmem>>, vector<128x512xbf16>
    %cst_13 = arith.constant dense<0.000000e+00> : vector<16x512xf32>
    %12 = tpu.matmul %10, %11, %cst_13 {dimension_numbers = #tpu.dot_dimension_numbers<[1], [0], [0], [1], [0, 0, 1, 1], [], []>} : vector<16x128xbf16>, vector<128x512xbf16>, vector<16x512xf32> -> vector<16x512xf32>
    %13 = arith.addf %9, %12 : vector<16x512xf32>
    %14 = vector.extract_strided_slice %13 {offsets = [0, 0], sizes = [16, 128], strides = [1, 1]} : vector<16x512xf32> to vector<16x128xf32>
    %cst_14 = arith.constant 5.000000e-01 : f32
    %15 = vector.broadcast %cst_14 : f32 to vector<16x128xf32>
    %16 = arith.mulf %15, %14 : vector<16x128xf32>
    %17 = math.tanh %16 : vector<16x128xf32>
    %cst_15 = arith.constant 1.000000e+00 : f32
    %18 = vector.broadcast %cst_15 : f32 to vector<16x128xf32>
    %19 = arith.addf %17, %18 : vector<16x128xf32>
    %cst_16 = arith.constant 5.000000e-01 : f32
    %20 = vector.broadcast %cst_16 : f32 to vector<16x128xf32>
    %21 = arith.mulf %20, %19 : vector<16x128xf32>
    %22 = vector.extract_strided_slice %13 {offsets = [0, 128], sizes = [16, 128], strides = [1, 1]} : vector<16x512xf32> to vector<16x128xf32>
    %cst_17 = arith.constant 5.000000e-01 : f32
    %23 = vector.broadcast %cst_17 : f32 to vector<16x128xf32>
    %24 = arith.mulf %23, %22 : vector<16x128xf32>
    %25 = math.tanh %24 : vector<16x128xf32>
    %cst_18 = arith.constant 1.000000e+00 : f32
    %26 = vector.broadcast %cst_18 : f32 to vector<16x128xf32>
    %27 = arith.addf %25, %26 : vector<16x128xf32>
    %cst_19 = arith.constant 5.000000e-01 : f32
    %28 = vector.broadcast %cst_19 : f32 to vector<16x128xf32>
    %29 = arith.mulf %28, %27 : vector<16x128xf32>
    %30 = vector.extract_strided_slice %13 {offsets = [0, 256], sizes = [16, 128], strides = [1, 1]} : vector<16x512xf32> to vector<16x128xf32>
    %31 = math.tanh %30 : vector<16x128xf32>
    %32 = vector.extract_strided_slice %13 {offsets = [0, 384], sizes = [16, 128], strides = [1, 1]} : vector<16x512xf32> to vector<16x128xf32>
    %cst_20 = arith.constant 5.000000e-01 : f32
    %33 = vector.broadcast %cst_20 : f32 to vector<16x128xf32>
    %34 = arith.mulf %33, %32 : vector<16x128xf32>
    %35 = math.tanh %34 : vector<16x128xf32>
    %cst_21 = arith.constant 1.000000e+00 : f32
    %36 = vector.broadcast %cst_21 : f32 to vector<16x128xf32>
    %37 = arith.addf %35, %36 : vector<16x128xf32>
    %cst_22 = arith.constant 5.000000e-01 : f32
    %38 = vector.broadcast %cst_22 : f32 to vector<16x128xf32>
    %39 = arith.mulf %38, %37 : vector<16x128xf32>
    %40 = arith.mulf %29, %8 : vector<16x128xf32>
    %41 = arith.mulf %21, %31 : vector<16x128xf32>
    %42 = arith.addf %40, %41 : vector<16x128xf32>
    %43 = math.tanh %42 : vector<16x128xf32>
    %44 = arith.mulf %39, %43 : vector<16x128xf32>
    %c16 = arith.constant 16 : index
    %c0_23 = arith.constant 0 : index
    %45 = vector.load %arg7[%c16, %c0_23] : memref<128x512xf32, #tpu.memory_space<vmem>>, vector<16x512xf32>
    %46 = arith.truncf %44 : vector<16x128xf32> to vector<16x128xbf16>
    %c0_24 = arith.constant 0 : index
    %c0_25 = arith.constant 0 : index
    %47 = vector.load %arg2[%c0_24, %c0_25] : memref<128x512xbf16, #tpu.memory_space<vmem>>, vector<128x512xbf16>
    %cst_26 = arith.constant dense<0.000000e+00> : vector<16x512xf32>
    %48 = tpu.matmul %46, %47, %cst_26 {dimension_numbers = #tpu.dot_dimension_numbers<[1], [0], [0], [1], [0, 0, 1, 1], [], []>} : vector<16x128xbf16>, vector<128x512xbf16>, vector<16x512xf32> -> vector<16x512xf32>
    %49 = arith.addf %45, %48 : vector<16x512xf32>
    %50 = vector.extract_strided_slice %49 {offsets = [0, 0], sizes = [16, 128], strides = [1, 1]} : vector<16x512xf32> to vector<16x128xf32>
    %cst_27 = arith.constant 5.000000e-01 : f32
    %51 = vector.broadcast %cst_27 : f32 to vector<16x128xf32>
    %52 = arith.mulf %51, %50 : vector<16x128xf32>
    %53 = math.tanh %52 : vector<16x128xf32>
    %cst_28 = arith.constant 1.000000e+00 : f32
    %54 = vector.broadcast %cst_28 : f32 to vector<16x128xf32>
    %55 = arith.addf %53, %54 : vector<16x128xf32>
    %cst_29 = arith.constant 5.000000e-01 : f32
    %56 = vector.broadcast %cst_29 : f32 to vector<16x128xf32>
    %57 = arith.mulf %56, %55 : vector<16x128xf32>
    %58 = vector.extract_strided_slice %49 {offsets = [0, 128], sizes = [16, 128], strides = [1, 1]} : vector<16x512xf32> to vector<16x128xf32>
    %cst_30 = arith.constant 5.000000e-01 : f32
    %59 = vector.broadcast %cst_30 : f32 to vector<16x128xf32>
    %60 = arith.mulf %59, %58 : vector<16x128xf32>
    %61 = math.tanh %60 : vector<16x128xf32>
    %cst_31 = arith.constant 1.000000e+00 : f32
    %62 = vector.broadcast %cst_31 : f32 to vector<16x128xf32>
    %63 = arith.addf %61, %62 : vector<16x128xf32>
    %cst_32 = arith.constant 5.000000e-01 : f32
    %64 = vector.broadcast %cst_32 : f32 to vector<16x128xf32>
    %65 = arith.mulf %64, %63 : vector<16x128xf32>
    %66 = vector.extract_strided_slice %49 {offsets = [0, 256], sizes = [16, 128], strides = [1, 1]} : vector<16x512xf32> to vector<16x128xf32>
    %67 = math.tanh %66 : vector<16x128xf32>
    %68 = vector.extract_strided_slice %49 {offsets = [0, 384], sizes = [16, 128], strides = [1, 1]} : vector<16x512xf32> to vector<16x128xf32>
    %cst_33 = arith.constant 5.000000e-01 : f32
    %69 = vector.broadcast %cst_33 : f32 to vector<16x128xf32>
    %70 = arith.mulf %69, %68 : vector<16x128xf32>
    %71 = math.tanh %70 : vector<16x128xf32>
    %cst_34 = arith.constant 1.000000e+00 : f32
    %72 = vector.broadcast %cst_34 : f32 to vector<16x128xf32>
    %73 = arith.addf %71, %72 : vector<16x128xf32>
    %cst_35 = arith.constant 5.000000e-01 : f32
    %74 = vector.broadcast %cst_35 : f32 to vector<16x128xf32>
    %75 = arith.mulf %74, %73 : vector<16x128xf32>
    %76 = arith.mulf %65, %42 : vector<16x128xf32>
    %77 = arith.mulf %57, %67 : vector<16x128xf32>
    %78 = arith.addf %76, %77 : vector<16x128xf32>
    %79 = math.tanh %78 : vector<16x128xf32>
    %80 = arith.mulf %75, %79 : vector<16x128xf32>
    %c32 = arith.constant 32 : index
    %c0_36 = arith.constant 0 : index
    %81 = vector.load %arg7[%c32, %c0_36] : memref<128x512xf32, #tpu.memory_space<vmem>>, vector<16x512xf32>
    %82 = arith.truncf %80 : vector<16x128xf32> to vector<16x128xbf16>
    %c0_37 = arith.constant 0 : index
    %c0_38 = arith.constant 0 : index
    %83 = vector.load %arg2[%c0_37, %c0_38] : memref<128x512xbf16, #tpu.memory_space<vmem>>, vector<128x512xbf16>
    %cst_39 = arith.constant dense<0.000000e+00> : vector<16x512xf32>
    %84 = tpu.matmul %82, %83, %cst_39 {dimension_numbers = #tpu.dot_dimension_numbers<[1], [0], [0], [1], [0, 0, 1, 1], [], []>} : vector<16x128xbf16>, vector<128x512xbf16>, vector<16x512xf32> -> vector<16x512xf32>
    %85 = arith.addf %81, %84 : vector<16x512xf32>
    %86 = vector.extract_strided_slice %85 {offsets = [0, 0], sizes = [16, 128], strides = [1, 1]} : vector<16x512xf32> to vector<16x128xf32>
    %cst_40 = arith.constant 5.000000e-01 : f32
    %87 = vector.broadcast %cst_40 : f32 to vector<16x128xf32>
    %88 = arith.mulf %87, %86 : vector<16x128xf32>
    %89 = math.tanh %88 : vector<16x128xf32>
    %cst_41 = arith.constant 1.000000e+00 : f32
    %90 = vector.broadcast %cst_41 : f32 to vector<16x128xf32>
    %91 = arith.addf %89, %90 : vector<16x128xf32>
    %cst_42 = arith.constant 5.000000e-01 : f32
    %92 = vector.broadcast %cst_42 : f32 to vector<16x128xf32>
    %93 = arith.mulf %92, %91 : vector<16x128xf32>
    %94 = vector.extract_strided_slice %85 {offsets = [0, 128], sizes = [16, 128], strides = [1, 1]} : vector<16x512xf32> to vector<16x128xf32>
    %cst_43 = arith.constant 5.000000e-01 : f32
    %95 = vector.broadcast %cst_43 : f32 to vector<16x128xf32>
    %96 = arith.mulf %95, %94 : vector<16x128xf32>
    %97 = math.tanh %96 : vector<16x128xf32>
    %cst_44 = arith.constant 1.000000e+00 : f32
    %98 = vector.broadcast %cst_44 : f32 to vector<16x128xf32>
    %99 = arith.addf %97, %98 : vector<16x128xf32>
    %cst_45 = arith.constant 5.000000e-01 : f32
    %100 = vector.broadcast %cst_45 : f32 to vector<16x128xf32>
    %101 = arith.mulf %100, %99 : vector<16x128xf32>
    %102 = vector.extract_strided_slice %85 {offsets = [0, 256], sizes = [16, 128], strides = [1, 1]} : vector<16x512xf32> to vector<16x128xf32>
    %103 = math.tanh %102 : vector<16x128xf32>
    %104 = vector.extract_strided_slice %85 {offsets = [0, 384], sizes = [16, 128], strides = [1, 1]} : vector<16x512xf32> to vector<16x128xf32>
    %cst_46 = arith.constant 5.000000e-01 : f32
    %105 = vector.broadcast %cst_46 : f32 to vector<16x128xf32>
    %106 = arith.mulf %105, %104 : vector<16x128xf32>
    %107 = math.tanh %106 : vector<16x128xf32>
    %cst_47 = arith.constant 1.000000e+00 : f32
    %108 = vector.broadcast %cst_47 : f32 to vector<16x128xf32>
    %109 = arith.addf %107, %108 : vector<16x128xf32>
    %cst_48 = arith.constant 5.000000e-01 : f32
    %110 = vector.broadcast %cst_48 : f32 to vector<16x128xf32>
    %111 = arith.mulf %110, %109 : vector<16x128xf32>
    %112 = arith.mulf %101, %78 : vector<16x128xf32>
    %113 = arith.mulf %93, %103 : vector<16x128xf32>
    %114 = arith.addf %112, %113 : vector<16x128xf32>
    %115 = math.tanh %114 : vector<16x128xf32>
    %116 = arith.mulf %111, %115 : vector<16x128xf32>
    %c48 = arith.constant 48 : index
    %c0_49 = arith.constant 0 : index
    %117 = vector.load %arg7[%c48, %c0_49] : memref<128x512xf32, #tpu.memory_space<vmem>>, vector<16x512xf32>
    %118 = arith.truncf %116 : vector<16x128xf32> to vector<16x128xbf16>
    %c0_50 = arith.constant 0 : index
    %c0_51 = arith.constant 0 : index
    %119 = vector.load %arg2[%c0_50, %c0_51] : memref<128x512xbf16, #tpu.memory_space<vmem>>, vector<128x512xbf16>
    %cst_52 = arith.constant dense<0.000000e+00> : vector<16x512xf32>
    %120 = tpu.matmul %118, %119, %cst_52 {dimension_numbers = #tpu.dot_dimension_numbers<[1], [0], [0], [1], [0, 0, 1, 1], [], []>} : vector<16x128xbf16>, vector<128x512xbf16>, vector<16x512xf32> -> vector<16x512xf32>
    %121 = arith.addf %117, %120 : vector<16x512xf32>
    %122 = vector.extract_strided_slice %121 {offsets = [0, 0], sizes = [16, 128], strides = [1, 1]} : vector<16x512xf32> to vector<16x128xf32>
    %cst_53 = arith.constant 5.000000e-01 : f32
    %123 = vector.broadcast %cst_53 : f32 to vector<16x128xf32>
    %124 = arith.mulf %123, %122 : vector<16x128xf32>
    %125 = math.tanh %124 : vector<16x128xf32>
    %cst_54 = arith.constant 1.000000e+00 : f32
    %126 = vector.broadcast %cst_54 : f32 to vector<16x128xf32>
    %127 = arith.addf %125, %126 : vector<16x128xf32>
    %cst_55 = arith.constant 5.000000e-01 : f32
    %128 = vector.broadcast %cst_55 : f32 to vector<16x128xf32>
    %129 = arith.mulf %128, %127 : vector<16x128xf32>
    %130 = vector.extract_strided_slice %121 {offsets = [0, 128], sizes = [16, 128], strides = [1, 1]} : vector<16x512xf32> to vector<16x128xf32>
    %cst_56 = arith.constant 5.000000e-01 : f32
    %131 = vector.broadcast %cst_56 : f32 to vector<16x128xf32>
    %132 = arith.mulf %131, %130 : vector<16x128xf32>
    %133 = math.tanh %132 : vector<16x128xf32>
    %cst_57 = arith.constant 1.000000e+00 : f32
    %134 = vector.broadcast %cst_57 : f32 to vector<16x128xf32>
    %135 = arith.addf %133, %134 : vector<16x128xf32>
    %cst_58 = arith.constant 5.000000e-01 : f32
    %136 = vector.broadcast %cst_58 : f32 to vector<16x128xf32>
    %137 = arith.mulf %136, %135 : vector<16x128xf32>
    %138 = vector.extract_strided_slice %121 {offsets = [0, 256], sizes = [16, 128], strides = [1, 1]} : vector<16x512xf32> to vector<16x128xf32>
    %139 = math.tanh %138 : vector<16x128xf32>
    %140 = vector.extract_strided_slice %121 {offsets = [0, 384], sizes = [16, 128], strides = [1, 1]} : vector<16x512xf32> to vector<16x128xf32>
    %cst_59 = arith.constant 5.000000e-01 : f32
    %141 = vector.broadcast %cst_59 : f32 to vector<16x128xf32>
    %142 = arith.mulf %141, %140 : vector<16x128xf32>
    %143 = math.tanh %142 : vector<16x128xf32>
    %cst_60 = arith.constant 1.000000e+00 : f32
    %144 = vector.broadcast %cst_60 : f32 to vector<16x128xf32>
    %145 = arith.addf %143, %144 : vector<16x128xf32>
    %cst_61 = arith.constant 5.000000e-01 : f32
    %146 = vector.broadcast %cst_61 : f32 to vector<16x128xf32>
    %147 = arith.mulf %146, %145 : vector<16x128xf32>
    %148 = arith.mulf %137, %114 : vector<16x128xf32>
    %149 = arith.mulf %129, %139 : vector<16x128xf32>
    %150 = arith.addf %148, %149 : vector<16x128xf32>
    %151 = math.tanh %150 : vector<16x128xf32>
    %152 = arith.mulf %147, %151 : vector<16x128xf32>
    %c64 = arith.constant 64 : index
    %c0_62 = arith.constant 0 : index
    %153 = vector.load %arg7[%c64, %c0_62] : memref<128x512xf32, #tpu.memory_space<vmem>>, vector<16x512xf32>
    %154 = arith.truncf %152 : vector<16x128xf32> to vector<16x128xbf16>
    %c0_63 = arith.constant 0 : index
    %c0_64 = arith.constant 0 : index
    %155 = vector.load %arg2[%c0_63, %c0_64] : memref<128x512xbf16, #tpu.memory_space<vmem>>, vector<128x512xbf16>
    %cst_65 = arith.constant dense<0.000000e+00> : vector<16x512xf32>
    %156 = tpu.matmul %154, %155, %cst_65 {dimension_numbers = #tpu.dot_dimension_numbers<[1], [0], [0], [1], [0, 0, 1, 1], [], []>} : vector<16x128xbf16>, vector<128x512xbf16>, vector<16x512xf32> -> vector<16x512xf32>
    %157 = arith.addf %153, %156 : vector<16x512xf32>
    %158 = vector.extract_strided_slice %157 {offsets = [0, 0], sizes = [16, 128], strides = [1, 1]} : vector<16x512xf32> to vector<16x128xf32>
    %cst_66 = arith.constant 5.000000e-01 : f32
    %159 = vector.broadcast %cst_66 : f32 to vector<16x128xf32>
    %160 = arith.mulf %159, %158 : vector<16x128xf32>
    %161 = math.tanh %160 : vector<16x128xf32>
    %cst_67 = arith.constant 1.000000e+00 : f32
    %162 = vector.broadcast %cst_67 : f32 to vector<16x128xf32>
    %163 = arith.addf %161, %162 : vector<16x128xf32>
    %cst_68 = arith.constant 5.000000e-01 : f32
    %164 = vector.broadcast %cst_68 : f32 to vector<16x128xf32>
    %165 = arith.mulf %164, %163 : vector<16x128xf32>
    %166 = vector.extract_strided_slice %157 {offsets = [0, 128], sizes = [16, 128], strides = [1, 1]} : vector<16x512xf32> to vector<16x128xf32>
    %cst_69 = arith.constant 5.000000e-01 : f32
    %167 = vector.broadcast %cst_69 : f32 to vector<16x128xf32>
    %168 = arith.mulf %167, %166 : vector<16x128xf32>
    %169 = math.tanh %168 : vector<16x128xf32>
    %cst_70 = arith.constant 1.000000e+00 : f32
    %170 = vector.broadcast %cst_70 : f32 to vector<16x128xf32>
    %171 = arith.addf %169, %170 : vector<16x128xf32>
    %cst_71 = arith.constant 5.000000e-01 : f32
    %172 = vector.broadcast %cst_71 : f32 to vector<16x128xf32>
    %173 = arith.mulf %172, %171 : vector<16x128xf32>
    %174 = vector.extract_strided_slice %157 {offsets = [0, 256], sizes = [16, 128], strides = [1, 1]} : vector<16x512xf32> to vector<16x128xf32>
    %175 = math.tanh %174 : vector<16x128xf32>
    %176 = vector.extract_strided_slice %157 {offsets = [0, 384], sizes = [16, 128], strides = [1, 1]} : vector<16x512xf32> to vector<16x128xf32>
    %cst_72 = arith.constant 5.000000e-01 : f32
    %177 = vector.broadcast %cst_72 : f32 to vector<16x128xf32>
    %178 = arith.mulf %177, %176 : vector<16x128xf32>
    %179 = math.tanh %178 : vector<16x128xf32>
    %cst_73 = arith.constant 1.000000e+00 : f32
    %180 = vector.broadcast %cst_73 : f32 to vector<16x128xf32>
    %181 = arith.addf %179, %180 : vector<16x128xf32>
    %cst_74 = arith.constant 5.000000e-01 : f32
    %182 = vector.broadcast %cst_74 : f32 to vector<16x128xf32>
    %183 = arith.mulf %182, %181 : vector<16x128xf32>
    %184 = arith.mulf %173, %150 : vector<16x128xf32>
    %185 = arith.mulf %165, %175 : vector<16x128xf32>
    %186 = arith.addf %184, %185 : vector<16x128xf32>
    %187 = math.tanh %186 : vector<16x128xf32>
    %188 = arith.mulf %183, %187 : vector<16x128xf32>
    %c80 = arith.constant 80 : index
    %c0_75 = arith.constant 0 : index
    %189 = vector.load %arg7[%c80, %c0_75] : memref<128x512xf32, #tpu.memory_space<vmem>>, vector<16x512xf32>
    %190 = arith.truncf %188 : vector<16x128xf32> to vector<16x128xbf16>
    %c0_76 = arith.constant 0 : index
    %c0_77 = arith.constant 0 : index
    %191 = vector.load %arg2[%c0_76, %c0_77] : memref<128x512xbf16, #tpu.memory_space<vmem>>, vector<128x512xbf16>
    %cst_78 = arith.constant dense<0.000000e+00> : vector<16x512xf32>
    %192 = tpu.matmul %190, %191, %cst_78 {dimension_numbers = #tpu.dot_dimension_numbers<[1], [0], [0], [1], [0, 0, 1, 1], [], []>} : vector<16x128xbf16>, vector<128x512xbf16>, vector<16x512xf32> -> vector<16x512xf32>
    %193 = arith.addf %189, %192 : vector<16x512xf32>
    %194 = vector.extract_strided_slice %193 {offsets = [0, 0], sizes = [16, 128], strides = [1, 1]} : vector<16x512xf32> to vector<16x128xf32>
    %cst_79 = arith.constant 5.000000e-01 : f32
    %195 = vector.broadcast %cst_79 : f32 to vector<16x128xf32>
    %196 = arith.mulf %195, %194 : vector<16x128xf32>
    %197 = math.tanh %196 : vector<16x128xf32>
    %cst_80 = arith.constant 1.000000e+00 : f32
    %198 = vector.broadcast %cst_80 : f32 to vector<16x128xf32>
    %199 = arith.addf %197, %198 : vector<16x128xf32>
    %cst_81 = arith.constant 5.000000e-01 : f32
    %200 = vector.broadcast %cst_81 : f32 to vector<16x128xf32>
    %201 = arith.mulf %200, %199 : vector<16x128xf32>
    %202 = vector.extract_strided_slice %193 {offsets = [0, 128], sizes = [16, 128], strides = [1, 1]} : vector<16x512xf32> to vector<16x128xf32>
    %cst_82 = arith.constant 5.000000e-01 : f32
    %203 = vector.broadcast %cst_82 : f32 to vector<16x128xf32>
    %204 = arith.mulf %203, %202 : vector<16x128xf32>
    %205 = math.tanh %204 : vector<16x128xf32>
    %cst_83 = arith.constant 1.000000e+00 : f32
    %206 = vector.broadcast %cst_83 : f32 to vector<16x128xf32>
    %207 = arith.addf %205, %206 : vector<16x128xf32>
    %cst_84 = arith.constant 5.000000e-01 : f32
    %208 = vector.broadcast %cst_84 : f32 to vector<16x128xf32>
    %209 = arith.mulf %208, %207 : vector<16x128xf32>
    %210 = vector.extract_strided_slice %193 {offsets = [0, 256], sizes = [16, 128], strides = [1, 1]} : vector<16x512xf32> to vector<16x128xf32>
    %211 = math.tanh %210 : vector<16x128xf32>
    %212 = vector.extract_strided_slice %193 {offsets = [0, 384], sizes = [16, 128], strides = [1, 1]} : vector<16x512xf32> to vector<16x128xf32>
    %cst_85 = arith.constant 5.000000e-01 : f32
    %213 = vector.broadcast %cst_85 : f32 to vector<16x128xf32>
    %214 = arith.mulf %213, %212 : vector<16x128xf32>
    %215 = math.tanh %214 : vector<16x128xf32>
    %cst_86 = arith.constant 1.000000e+00 : f32
    %216 = vector.broadcast %cst_86 : f32 to vector<16x128xf32>
    %217 = arith.addf %215, %216 : vector<16x128xf32>
    %cst_87 = arith.constant 5.000000e-01 : f32
    %218 = vector.broadcast %cst_87 : f32 to vector<16x128xf32>
    %219 = arith.mulf %218, %217 : vector<16x128xf32>
    %220 = arith.mulf %209, %186 : vector<16x128xf32>
    %221 = arith.mulf %201, %211 : vector<16x128xf32>
    %222 = arith.addf %220, %221 : vector<16x128xf32>
    %223 = math.tanh %222 : vector<16x128xf32>
    %224 = arith.mulf %219, %223 : vector<16x128xf32>
    %c96 = arith.constant 96 : index
    %c0_88 = arith.constant 0 : index
    %225 = vector.load %arg7[%c96, %c0_88] : memref<128x512xf32, #tpu.memory_space<vmem>>, vector<16x512xf32>
    %226 = arith.truncf %224 : vector<16x128xf32> to vector<16x128xbf16>
    %c0_89 = arith.constant 0 : index
    %c0_90 = arith.constant 0 : index
    %227 = vector.load %arg2[%c0_89, %c0_90] : memref<128x512xbf16, #tpu.memory_space<vmem>>, vector<128x512xbf16>
    %cst_91 = arith.constant dense<0.000000e+00> : vector<16x512xf32>
    %228 = tpu.matmul %226, %227, %cst_91 {dimension_numbers = #tpu.dot_dimension_numbers<[1], [0], [0], [1], [0, 0, 1, 1], [], []>} : vector<16x128xbf16>, vector<128x512xbf16>, vector<16x512xf32> -> vector<16x512xf32>
    %229 = arith.addf %225, %228 : vector<16x512xf32>
    %230 = vector.extract_strided_slice %229 {offsets = [0, 0], sizes = [16, 128], strides = [1, 1]} : vector<16x512xf32> to vector<16x128xf32>
    %cst_92 = arith.constant 5.000000e-01 : f32
    %231 = vector.broadcast %cst_92 : f32 to vector<16x128xf32>
    %232 = arith.mulf %231, %230 : vector<16x128xf32>
    %233 = math.tanh %232 : vector<16x128xf32>
    %cst_93 = arith.constant 1.000000e+00 : f32
    %234 = vector.broadcast %cst_93 : f32 to vector<16x128xf32>
    %235 = arith.addf %233, %234 : vector<16x128xf32>
    %cst_94 = arith.constant 5.000000e-01 : f32
    %236 = vector.broadcast %cst_94 : f32 to vector<16x128xf32>
    %237 = arith.mulf %236, %235 : vector<16x128xf32>
    %238 = vector.extract_strided_slice %229 {offsets = [0, 128], sizes = [16, 128], strides = [1, 1]} : vector<16x512xf32> to vector<16x128xf32>
    %cst_95 = arith.constant 5.000000e-01 : f32
    %239 = vector.broadcast %cst_95 : f32 to vector<16x128xf32>
    %240 = arith.mulf %239, %238 : vector<16x128xf32>
    %241 = math.tanh %240 : vector<16x128xf32>
    %cst_96 = arith.constant 1.000000e+00 : f32
    %242 = vector.broadcast %cst_96 : f32 to vector<16x128xf32>
    %243 = arith.addf %241, %242 : vector<16x128xf32>
    %cst_97 = arith.constant 5.000000e-01 : f32
    %244 = vector.broadcast %cst_97 : f32 to vector<16x128xf32>
    %245 = arith.mulf %244, %243 : vector<16x128xf32>
    %246 = vector.extract_strided_slice %229 {offsets = [0, 256], sizes = [16, 128], strides = [1, 1]} : vector<16x512xf32> to vector<16x128xf32>
    %247 = math.tanh %246 : vector<16x128xf32>
    %248 = vector.extract_strided_slice %229 {offsets = [0, 384], sizes = [16, 128], strides = [1, 1]} : vector<16x512xf32> to vector<16x128xf32>
    %cst_98 = arith.constant 5.000000e-01 : f32
    %249 = vector.broadcast %cst_98 : f32 to vector<16x128xf32>
    %250 = arith.mulf %249, %248 : vector<16x128xf32>
    %251 = math.tanh %250 : vector<16x128xf32>
    %cst_99 = arith.constant 1.000000e+00 : f32
    %252 = vector.broadcast %cst_99 : f32 to vector<16x128xf32>
    %253 = arith.addf %251, %252 : vector<16x128xf32>
    %cst_100 = arith.constant 5.000000e-01 : f32
    %254 = vector.broadcast %cst_100 : f32 to vector<16x128xf32>
    %255 = arith.mulf %254, %253 : vector<16x128xf32>
    %256 = arith.mulf %245, %222 : vector<16x128xf32>
    %257 = arith.mulf %237, %247 : vector<16x128xf32>
    %258 = arith.addf %256, %257 : vector<16x128xf32>
    %259 = math.tanh %258 : vector<16x128xf32>
    %260 = arith.mulf %255, %259 : vector<16x128xf32>
    %c112 = arith.constant 112 : index
    %c0_101 = arith.constant 0 : index
    %261 = vector.load %arg7[%c112, %c0_101] : memref<128x512xf32, #tpu.memory_space<vmem>>, vector<16x512xf32>
    %262 = arith.truncf %260 : vector<16x128xf32> to vector<16x128xbf16>
    %c0_102 = arith.constant 0 : index
    %c0_103 = arith.constant 0 : index
    %263 = vector.load %arg2[%c0_102, %c0_103] : memref<128x512xbf16, #tpu.memory_space<vmem>>, vector<128x512xbf16>
    %cst_104 = arith.constant dense<0.000000e+00> : vector<16x512xf32>
    %264 = tpu.matmul %262, %263, %cst_104 {dimension_numbers = #tpu.dot_dimension_numbers<[1], [0], [0], [1], [0, 0, 1, 1], [], []>} : vector<16x128xbf16>, vector<128x512xbf16>, vector<16x512xf32> -> vector<16x512xf32>
    %265 = arith.addf %261, %264 : vector<16x512xf32>
    %266 = vector.extract_strided_slice %265 {offsets = [0, 0], sizes = [16, 128], strides = [1, 1]} : vector<16x512xf32> to vector<16x128xf32>
    %cst_105 = arith.constant 5.000000e-01 : f32
    %267 = vector.broadcast %cst_105 : f32 to vector<16x128xf32>
    %268 = arith.mulf %267, %266 : vector<16x128xf32>
    %269 = math.tanh %268 : vector<16x128xf32>
    %cst_106 = arith.constant 1.000000e+00 : f32
    %270 = vector.broadcast %cst_106 : f32 to vector<16x128xf32>
    %271 = arith.addf %269, %270 : vector<16x128xf32>
    %cst_107 = arith.constant 5.000000e-01 : f32
    %272 = vector.broadcast %cst_107 : f32 to vector<16x128xf32>
    %273 = arith.mulf %272, %271 : vector<16x128xf32>
    %274 = vector.extract_strided_slice %265 {offsets = [0, 128], sizes = [16, 128], strides = [1, 1]} : vector<16x512xf32> to vector<16x128xf32>
    %cst_108 = arith.constant 5.000000e-01 : f32
    %275 = vector.broadcast %cst_108 : f32 to vector<16x128xf32>
    %276 = arith.mulf %275, %274 : vector<16x128xf32>
    %277 = math.tanh %276 : vector<16x128xf32>
    %cst_109 = arith.constant 1.000000e+00 : f32
    %278 = vector.broadcast %cst_109 : f32 to vector<16x128xf32>
    %279 = arith.addf %277, %278 : vector<16x128xf32>
    %cst_110 = arith.constant 5.000000e-01 : f32
    %280 = vector.broadcast %cst_110 : f32 to vector<16x128xf32>
    %281 = arith.mulf %280, %279 : vector<16x128xf32>
    %282 = vector.extract_strided_slice %265 {offsets = [0, 256], sizes = [16, 128], strides = [1, 1]} : vector<16x512xf32> to vector<16x128xf32>
    %283 = math.tanh %282 : vector<16x128xf32>
    %284 = vector.extract_strided_slice %265 {offsets = [0, 384], sizes = [16, 128], strides = [1, 1]} : vector<16x512xf32> to vector<16x128xf32>
    %cst_111 = arith.constant 5.000000e-01 : f32
    %285 = vector.broadcast %cst_111 : f32 to vector<16x128xf32>
    %286 = arith.mulf %285, %284 : vector<16x128xf32>
    %287 = math.tanh %286 : vector<16x128xf32>
    %cst_112 = arith.constant 1.000000e+00 : f32
    %288 = vector.broadcast %cst_112 : f32 to vector<16x128xf32>
    %289 = arith.addf %287, %288 : vector<16x128xf32>
    %cst_113 = arith.constant 5.000000e-01 : f32
    %290 = vector.broadcast %cst_113 : f32 to vector<16x128xf32>
    %291 = arith.mulf %290, %289 : vector<16x128xf32>
    %292 = arith.mulf %281, %258 : vector<16x128xf32>
    %293 = arith.mulf %273, %283 : vector<16x128xf32>
    %294 = arith.addf %292, %293 : vector<16x128xf32>
    %295 = math.tanh %294 : vector<16x128xf32>
    %296 = arith.mulf %291, %295 : vector<16x128xf32>
    %297 = arith.truncf %296 : vector<16x128xf32> to vector<16x128xbf16>
    %c0_114 = arith.constant 0 : index
    %c0_115 = arith.constant 0 : index
    %298 = vector.load %arg4[%c0_114, %c0_115] : memref<128x128xbf16, #tpu.memory_space<vmem>>, vector<128x128xbf16>
    %cst_116 = arith.constant dense<0.000000e+00> : vector<16x128xf32>
    %299 = tpu.matmul %297, %298, %cst_116 {dimension_numbers = #tpu.dot_dimension_numbers<[1], [0], [0], [1], [0, 0, 1, 1], [], []>} : vector<16x128xbf16>, vector<128x128xbf16>, vector<16x128xf32> -> vector<16x128xf32>
    %c0_117 = arith.constant 0 : index
    %c0_118 = arith.constant 0 : index
    %300 = vector.load %arg5[%c0_117, %c0_118] : memref<1x128xf32, #tpu.memory_space<vmem>>, vector<1x128xf32>
    %301 = vector.broadcast %300 : vector<1x128xf32> to vector<16x128xf32>
    %302 = arith.addf %299, %301 : vector<16x128xf32>
    %c0_119 = arith.constant 0 : index
    %c0_120 = arith.constant 0 : index
    %303 = vector.load %arg6[%c0_119, %c0_120] : memref<16x128xf32, #tpu.memory_space<vmem>>, vector<16x128xf32>
    tpu.vector_store %arg6[%c0_119, %c0_120], %302 {strides = array<i32>} : memref<16x128xf32, #tpu.memory_space<vmem>>, vector<16x128xf32>,
    return
  }
}

</mosaic_0001>

<bundles_post_ra>
// kernel: rnn_forward.1
= control target key start
LH: loop header
LB: loop body
LE: loop exit
PB: predicated region body
PF: predicated region fallthrough
CT: control target
= control target key end

     0   :  { %11 = vsyncpa [#allocation4], 0  ;;  %s2097_s24 = smov [#allocation3]   ;;  %s2098_s26 = smov 256   ;;  %s2925_s0 = inlined_call_operand.vmem [shape: bf16[128,32], index: 0, kind: input, shape index: {}]   ;;  %s2926_s1 = inlined_call_operand.vmem [shape: bf16[32,512], index: 1, kind: input, shape index: {}]   ;;  %s2927_s2 = inlined_call_operand.hbm [shape: bf16[128,512], index: 2, kind: input, shape index: {}]   ;;  %s2928_s3 = inlined_call_operand.vmem [shape: f32[1,512], index: 3, kind: input, shape index: {}]   ;;  %s2929_s4 = inlined_call_operand.vmem [shape: bf16[128,128], index: 4, kind: input, shape index: {}]   ;;  %s2930_s5 = inlined_call_operand.vmem [shape: f32[1,128], index: 5, kind: input, shape index: {}]   ;;  %s2931_s6 = inlined_call_operand.vmem [shape: f32[16,128], index: 6, kind: output, shape index: {}]  }
   0x1   :  { %s20_s23 = sshll.u32 %s2927_s2, 4  ;;  %s22_s25 = sshll.u32 %s2097_s24, 4  ;;  %s21_s23 = int_to_ptr.hbm [resolvable:$true] %s20_s23  ;;  %s23_s25 = int_to_ptr.vmem [resolvable:$true] %s22_s25 }
   0x2   :  { %s2099_s27 = smov 16  }
   0x3   :  { %28 = dma.hbm_to_vmem [thread:$0]  %s21_s23, 4096, %s23_s25, [#allocation4], %s2098_s26, %s2098_s26, %s2099_s27  }
   0x4   :  { %2095 = dma.done.wait [#allocation4], 4096  }
   0x5   :  { %2096 = vsyncadd [#allocation4], 4294963200  ;;  %v1642_v0 = vld [vmem:[%s2926_s1 + $0x20] sm:$0xf]  ;;  %v1862_v1 = vld [vmem:[%s2926_s1 + $0x2c] sm:$0xf0] }
   0x6   :  { %v1650_v2 = vld [vmem:[%s2926_s1 + $0x28] sm:$0xf]  ;;  %v1643_v3 = vor.u32 %v1862_v1, %v1642_v0  ;;  %v1863_v4 = vld [vmem:[%s2926_s1 + $0x34] sm:$0xf0]  ;;  %v1861_v5 = vld [vmem:[%s2926_s1 + $0x2c] sm:$0xf] }
   0x7   :  { %v1652_v6 = vld [vmem:[%s2926_s1 + $0x38] sm:$0xf0]  ;;  %v1651_v7 = vor.u32 %v1863_v4, %v1650_v2  ;;  %v1626_v9 = vld [vmem:[%s2926_s1] sm:$0xf]  ;;  %v1858_v10 = vld [vmem:[%s2926_s1 + $0xc] sm:$0xf0] }
   0x8   :  { %v1655_v8 = vor.u32 %v1861_v5, %v1652_v6  ;;  %v1634_v11 = vld [vmem:[%s2926_s1 + $0x8] sm:$0xf]  ;;  %185 = vmatpush.bf16.msra.mxu0 %v1643_v3  ;;  %1904 = vmatpush.bf16.msra.mxu1 %v1643_v3  ;;  %v1627_v12 = vor.u32 %v1858_v10, %v1626_v9  ;;  %v1859_v13 = vld [vmem:[%s2926_s1 + $0x14] sm:$0xf0]  ;;  %v1857_v14 = vld [vmem:[%s2926_s1 + $0xc] sm:$0xf] }
   0x9   :  { %v1636_v15 = vld [vmem:[%s2926_s1 + $0x18] sm:$0xf0]  ;;  %283 = vmatpush.bf16.msra.mxu2 %v1651_v7  ;;  %v1635_v16 = vor.u32 %v1859_v13, %v1634_v11  ;;  %v1848_v18 = vld [vmem:[%s2925_s0] sm:$0xff]  ;;  %vm154_vm0 = vcmask 261120   ;;  %v1644_v21 = vld [vmem:[%s2926_s1 + $0x30] sm:$0xf0] }
   0xa   :  { %332 = vmatpush.bf16.msra.mxu3 %v1655_v8  ;;  %v1639_v17 = vor.u32 %v1857_v14, %v1636_v15  ;;  %v1860_v19 = vld [vmem:[%s2926_s1 + $0x24] sm:$0xf]  ;;  %v2184_v20 = vld [vmem:[%s2925_s0 + $0x38] sm:$0xff]  ;;  %v1628_v24 = vld [vmem:[%s2926_s1 + $0x10] sm:$0xf0] }
   0xb   :  { %v1856_v22 = vld [vmem:[%s2926_s1 + $0x4] sm:$0xf]  ;;  %v1647_v23 = vor.u32 %v1860_v19, %v1644_v21  ;;  %v1804_v26 = vld [vmem:[#allocation3 + $0xf0] sm:$0xf0]  ;;  %v1810_v27 = vld [vmem:[#allocation3 + $0xe8] sm:$0xf] }
   0xc   :  { %v1892_v25 = vld [vmem:[#allocation3 + $0xe4] sm:$0xf]  ;;  %186 = vmatpush.bf16.msra.mxu0 %v1627_v12  ;;  %1905 = vmatpush.bf16.msra.mxu1 %v1627_v12  ;;  %v1895_v28 = vld [vmem:[#allocation3 + $0xf4] sm:$0xf0]  ;;  %v1893_v29 = vld [vmem:[#allocation3 + $0xec] sm:$0xf]  ;;  %v1631_v32 = vor.u32 %v1856_v22, %v1628_v24 }
   0xd   :  { %284 = vmatpush.bf16.msra.mxu2 %v1635_v16  ;;  %v2195_v30 = vor.u32 %v1895_v28, %v1810_v27  ;;  %v1812_v31 = vld [vmem:[#allocation3 + $0xf8] sm:$0xf0]  ;;  %v2202_v34 = vor.u32 %v1892_v25, %v1804_v26  ;;  %v1802_v35 = vld [vmem:[#allocation3 + $0xe0] sm:$0xf]  ;;  %v1894_v36 = vld [vmem:[#allocation3 + $0xec] sm:$0xf0] }
   0xe   :  { %333 = vmatpush.bf16.msra.mxu3 %v1639_v17  ;;  %v2197_v33 = vor.u32 %v1893_v29, %v1812_v31  ;;  %v1888_v37 = vld [vmem:[#allocation3 + $0xc4] sm:$0xf]  ;;  %v2208_v38 = vor.u32 %v1894_v36, %v1802_v35  ;;  %v1788_v39 = vld [vmem:[#allocation3 + $0xd0] sm:$0xf0]  ;;  %v1794_v40 = vld [vmem:[#allocation3 + $0xc8] sm:$0xf] }
   0xf   :  { %1656 = vmatmul.msk.bf16.vlgmr.msra.gmra.mxu0 %vm154_vm0, %v1848_v18  ;;  %1663 = vmatmul.msk.bf16.vlgmr.msra.gmra.mxu1 %vm154_vm0, %v2184_v20  ;;  %v1891_v41 = vld [vmem:[#allocation3 + $0xd4] sm:$0xf0]  ;;  %v1889_v43 = vld [vmem:[#allocation3 + $0xcc] sm:$0xf]  ;;  %v1796_v44 = vld [vmem:[#allocation3 + $0xd8] sm:$0xf0]  ;;  %v2214_v46 = vor.u32 %v1888_v37, %v1788_v39 }
  0x10   :  { %234 = vmatpush.bf16.msrb.mxu1 %v1647_v23  ;;  %1672 = vmatmul.msk.bf16.vlgmr.msra.gmra.mxu2 %vm154_vm0, %v1848_v18  ;;  %v2210_v42 = vor.u32 %v1891_v41, %v1794_v40  ;;  %v1786_v45 = vld [vmem:[#allocation3 + $0xc0] sm:$0xf]  ;;  %v2216_v47 = vor.u32 %v1889_v43, %v1796_v44  ;;  %v1890_v48 = vld [vmem:[#allocation3 + $0xcc] sm:$0xf0]  ;;  %v1849_v50 = vld [vmem:[%s2925_s0 + $0x8] sm:$0xff] }
  0x11   :  { %1680 = vmatmul.msk.bf16.vlgmr.msra.gmra.mxu3 %vm154_vm0, %v1848_v18  ;;  %667 = vmatpush.bf16.msrb.mxu2 %v2195_v30  ;;  %v2218_v49 = vor.u32 %v1890_v48, %v1786_v45  ;;  %v1884_v51 = vld [vmem:[#allocation3 + $0xa4] sm:$0xf]  ;;  %v1772_v52 = vld [vmem:[#allocation3 + $0xb0] sm:$0xf0]  ;;  %v1778_v53 = vld [vmem:[#allocation3 + $0xa8] sm:$0xf] }
  0x12   :  { %681 = vmatpush.bf16.msrb.mxu3 %v2197_v33  ;;  %639 = vmatpush.bf16.msrb.mxu0 %v2208_v38  ;;  %v2231_v54 = vor.u32 %v1884_v51, %v1772_v52  ;;  %v1887_v55 = vld [vmem:[#allocation3 + $0xb4] sm:$0xf0]  ;;  %v1885_v56 = vld [vmem:[#allocation3 + $0xac] sm:$0xf]  ;;  %v1780_v57 = vld [vmem:[#allocation3 + $0xb8] sm:$0xf0] }
  0x13   :  { %v2233_v58 = vor.u32 %v1887_v55, %v1778_v53  ;;  %v2235_v59 = vor.u32 %v1885_v56, %v1780_v57  ;;  %v1770_v60 = vld [vmem:[#allocation3 + $0xa0] sm:$0xf]  ;;  %v1886_v61 = vld [vmem:[#allocation3 + $0xac] sm:$0xf0]  ;;  %v1880_v0 = vld [vmem:[#allocation3 + $0x84] sm:$0xf] }
  0x14   :  { %235 = vmatpush.bf16.msrb.mxu1 %v1631_v32  ;;  %v2238_v62 = vor.u32 %v1886_v61, %v1770_v60  ;;  %v1850_v63 = vld [vmem:[%s2925_s0 + $0x10] sm:$0xff]  ;;  %v1762_v2 = vld [vmem:[#allocation3 + $0x88] sm:$0xf]  ;;  %v1883_v4 = vld [vmem:[#allocation3 + $0x94] sm:$0xf0] }
  0x15   :  { %668 = vmatpush.bf16.msrb.mxu2 %v2210_v42  ;;  %v1756_v1 = vld [vmem:[#allocation3 + $0x90] sm:$0xf0]  ;;  %v1881_v5 = vld [vmem:[#allocation3 + $0x8c] sm:$0xf]  ;;  %v1764_v6 = vld [vmem:[#allocation3 + $0x98] sm:$0xf0]  ;;  %v2252_v7 = vor.u32 %v1883_v4, %v1762_v2 }
  0x16   :  { %682 = vmatpush.bf16.msrb.mxu3 %v2216_v47  ;;  %640 = vmatpush.bf16.msrb.mxu0 %v2218_v49  ;;  %v2250_v3 = vor.u32 %v1880_v0, %v1756_v1  ;;  %v2254_v8 = vor.u32 %v1881_v5, %v1764_v6  ;;  %v1754_v9 = vld [vmem:[#allocation3 + $0x80] sm:$0xf]  ;;  %v1882_v10 = vld [vmem:[#allocation3 + $0x8c] sm:$0xf0]  ;;  %v1851_v12 = vld [vmem:[%s2925_s0 + $0x18] sm:$0xff] }
  0x17   :  { %v2257_v11 = vor.u32 %v1882_v10, %v1754_v9  ;;  %v1876_v13 = vld [vmem:[#allocation3 + $0x64] sm:$0xf]  ;;  %v1740_v14 = vld [vmem:[#allocation3 + $0x70] sm:$0xf0]  ;;  %v1746_v15 = vld [vmem:[#allocation3 + $0x68] sm:$0xf] }
  0x18   :  { %653 = vmatpush.bf16.msra.mxu1 %v2202_v34  ;;  %v2269_v16 = vor.u32 %v1876_v13, %v1740_v14  ;;  %v1879_v17 = vld [vmem:[#allocation3 + $0x74] sm:$0xf0]  ;;  %v1748_v19 = vld [vmem:[#allocation3 + $0x78] sm:$0xf0]  ;;  %v1738_v23 = vld [vmem:[#allocation3 + $0x60] sm:$0xf] }
  0x19   :  { %669 = vmatpush.bf16.msrb.mxu2 %v2233_v58  ;;  %v2271_v21 = vor.u32 %v1879_v17, %v1746_v15  ;;  %v1878_v24 = vld [vmem:[#allocation3 + $0x6c] sm:$0xf0]  ;;  %v1852_v26 = vld [vmem:[%s2925_s0 + $0x20] sm:$0xff]  ;;  %v1724_v28 = vld [vmem:[#allocation3 + $0x50] sm:$0xf0] }
  0x1a   :  { %683 = vmatpush.bf16.msrb.mxu3 %v2235_v59  ;;  %641 = vmatpush.bf16.msrb.mxu0 %v2238_v62  ;;  %v2276_v25 = vor.u32 %v1878_v24, %v1738_v23  ;;  %v1872_v27 = vld [vmem:[#allocation3 + $0x44] sm:$0xf]  ;;  %v1730_v29 = vld [vmem:[#allocation3 + $0x48] sm:$0xf]  ;;  %v1875_v32 = vld [vmem:[#allocation3 + $0x54] sm:$0xf0] }
  0x1b   :  { %v2288_v31 = vor.u32 %v1872_v27, %v1724_v28  ;;  %v1722_v35 = vld [vmem:[#allocation3 + $0x40] sm:$0xf]  ;;  %v1874_v36 = vld [vmem:[#allocation3 + $0x4c] sm:$0xf0]  ;;  %v2290_v37 = vor.u32 %v1875_v32, %v1730_v29  ;;  %v1873_v40 = vld [vmem:[#allocation3 + $0x4c] sm:$0xf] }
  0x1c   :  { %654 = vmatpush.bf16.msra.mxu1 %v2214_v46  ;;  %v2292_v39 = vor.u32 %v1874_v36, %v1722_v35  ;;  %v1732_v41 = vld [vmem:[#allocation3 + $0x58] sm:$0xf0]  ;;  %v1706_v43 = vld [vmem:[#allocation3 + $0x20] sm:$0xf]  ;;  %v1870_v45 = vld [vmem:[#allocation3 + $0x2c] sm:$0xf0] }
  0x1d   :  { %670 = vmatpush.bf16.msrb.mxu2 %v2252_v7  ;;  %v2295_v44 = vor.u32 %v1873_v40, %v1732_v41  ;;  %v2299_v48 = vor.u32 %v1870_v45, %v1706_v43  ;;  %v1866_v51 = vld [vmem:[#allocation3 + $0xc] sm:$0xf0]  ;;  %v1853_v53 = vld [vmem:[%s2925_s0 + $0x28] sm:$0xff]  ;;  %v1868_v55 = vld [vmem:[#allocation3 + $0x24] sm:$0xf] }
  0x1e   :  { %684 = vmatpush.bf16.msrb.mxu3 %v2254_v8  ;;  %642 = vmatpush.bf16.msrb.mxu0 %v2257_v11  ;;  %v1708_v56 = vld [vmem:[#allocation3 + $0x30] sm:$0xf0]  ;;  %v1714_v57 = vld [vmem:[#allocation3 + $0x28] sm:$0xf]  ;;  %v1871_v61 = vld [vmem:[#allocation3 + $0x34] sm:$0xf0] }
  0x1f   :  { %1657 = vmatmul.msk.bf16.gmra.mxu0 %vm154_vm0, %v1849_v50  ;;  %1664 = vmatmul.msk.bf16.vlgmr.msrb.gmra.mxu1 %vm154_vm0, %v1848_v18  ;;  %v1877_v18 = vld [vmem:[#allocation3 + $0x6c] sm:$0xf]  ;;  %v2314_v60 = vor.u32 %v1868_v55, %v1708_v56  ;;  %v1716_v0 = vld [vmem:[#allocation3 + $0x38] sm:$0xf0]  ;;  %v2317_v1 = vor.u32 %v1871_v61, %v1714_v57  ;;  %v1698_v4 = vld [vmem:[#allocation3 + $0x8] sm:$0xf] }
  0x20   :  { %1673 = vmatmul.msk.bf16.gmra.mxu2 %vm154_vm0, %v1849_v50  ;;  %655 = vmatpush.bf16.msra.mxu1 %v2231_v54  ;;  %v2273_v22 = vor.u32 %v1877_v18, %v1748_v19  ;;  %v1867_v5 = vld [vmem:[#allocation3 + $0x14] sm:$0xf0]  ;;  %v1865_v6 = vld [vmem:[#allocation3 + $0xc] sm:$0xf]  ;;  %v1854_v9 = vld [vmem:[%s2925_s0 + $0x30] sm:$0xff]  ;;  %v2100_v18 = vmov 0  }
  0x21   :  { %1681 = vmatmul.msk.bf16.gmra.mxu3 %vm154_vm0, %v1849_v50  ;;  %671 = vmatpush.bf16.msrb.mxu2 %v2271_v21  ;;  %v2329_v10 = vor.u32 %v1867_v5, %v1698_v4  ;;  %v1864_v14 = vld [vmem:[#allocation3 + $0x4] sm:$0xf]  ;;  %v1692_v15 = vld [vmem:[#allocation3 + $0x10] sm:$0xf0] }
  0x22   :  { %685 = vmatpush.bf16.msrb.mxu3 %v2273_v22  ;;  %643 = vmatpush.bf16.msrb.mxu0 %v2276_v25  ;;  %v2341_v17 = vor.u32 %v1864_v14, %v1692_v15 }
  0x24   :  { %656 = vmatpush.bf16.msra.mxu1 %v2250_v3 }
  0x25   :  { %672 = vmatpush.bf16.msrb.mxu2 %v2290_v37 }
  0x26   :  { %644 = vmatpush.bf16.msrb.mxu0 %v2292_v39  ;;  %686 = vmatpush.bf16.msrb.mxu3 %v2295_v44 }
  0x28   :  { %657 = vmatpush.bf16.msra.mxu1 %v2269_v16 }
  0x29   :  { %673 = vmatpush.bf16.msrb.mxu2 %v2317_v1 }
  0x2a   :  { %645 = vmatpush.bf16.msrb.mxu0 %v2299_v48 }
  0x2c   :  { %658 = vmatpush.bf16.msra.mxu1 %v2288_v31 }
  0x2d   :  { %674 = vmatpush.bf16.msrb.mxu2 %v2329_v10 }
  0x2f   :  { %1658 = vmatmul.msk.bf16.gmra.mxu0 %vm154_vm0, %v1850_v63  ;;  %1665 = vmatmul.msk.bf16.gmra.mxu1 %vm154_vm0, %v1849_v50  ;;  %v1690_v50 = vld [vmem:[#allocation3] sm:$0xf] }
  0x30   :  { %1674 = vmatmul.msk.bf16.gmra.mxu2 %vm154_vm0, %v1850_v63  ;;  %v2303_v52 = vor.u32 %v1866_v51, %v1690_v50  ;;  %659 = vmatpush.bf16.msra.mxu1 %v2314_v60 }
  0x31   :  { %1682 = vmatmul.msk.bf16.gmra.mxu3 %vm154_vm0, %v1850_v63  ;;  %776 = vmatpush.bf16.msra.mxu2 %v2195_v30 }
  0x32   :  { %646 = vmatpush.bf16.msrb.mxu0 %v2303_v52 }
  0x34   :  { %660 = vmatpush.bf16.msra.mxu1 %v2341_v17 }
  0x35   :  { %777 = vmatpush.bf16.msra.mxu2 %v2210_v42 }
  0x36   :  { %748 = vmatpush.bf16.msra.mxu0 %v2208_v38 }
  0x38   :  { %762 = vmatpush.bf16.msrb.mxu1 %v2202_v34 }
  0x39   :  { %778 = vmatpush.bf16.msra.mxu2 %v2233_v58 }
  0x3a   :  { %749 = vmatpush.bf16.msra.mxu0 %v2218_v49 }
  0x3c   :  { %763 = vmatpush.bf16.msrb.mxu1 %v2214_v46 }
  0x3d   :  { %779 = vmatpush.bf16.msra.mxu2 %v2252_v7 }
  0x3e   :  { %750 = vmatpush.bf16.msra.mxu0 %v2238_v62 }
  0x3f   :  { %1659 = vmatmul.msk.bf16.gmra.mxu0 %vm154_vm0, %v1851_v12  ;;  %1666 = vmatmul.msk.bf16.gmra.mxu1 %vm154_vm0, %v1850_v63  ;;  %v1869_v63 = vld [vmem:[#allocation3 + $0x2c] sm:$0xf] }
  0x40   :  { %1675 = vmatmul.msk.bf16.gmra.mxu2 %vm154_vm0, %v1851_v12  ;;  %v2319_v2 = vor.u32 %v1869_v63, %v1716_v0  ;;  %764 = vmatpush.bf16.msrb.mxu1 %v2231_v54 }
  0x41   :  { %1683 = vmatmul.msk.bf16.gmra.mxu3 %vm154_vm0, %v1851_v12  ;;  %780 = vmatpush.bf16.msra.mxu2 %v2271_v21 }
  0x42   :  { %687 = vmatpush.bf16.msrb.mxu3 %v2319_v2  ;;  %751 = vmatpush.bf16.msra.mxu0 %v2257_v11 }
  0x44   :  { %765 = vmatpush.bf16.msrb.mxu1 %v2250_v3 }
  0x45   :  { %781 = vmatpush.bf16.msra.mxu2 %v2290_v37 }
  0x46   :  { %752 = vmatpush.bf16.msra.mxu0 %v2276_v25 }
  0x48   :  { %766 = vmatpush.bf16.msrb.mxu1 %v2269_v16 }
  0x49   :  { %782 = vmatpush.bf16.msra.mxu2 %v2317_v1 }
  0x4a   :  { %753 = vmatpush.bf16.msra.mxu0 %v2292_v39 }
  0x4c   :  { %767 = vmatpush.bf16.msrb.mxu1 %v2288_v31 }
  0x4d   :  { %783 = vmatpush.bf16.msra.mxu2 %v2329_v10 }
  0x4e   :  { %754 = vmatpush.bf16.msra.mxu0 %v2299_v48 }
  0x4f   :  { %1660 = vmatmul.msk.bf16.gmra.mxu0 %vm154_vm0, %v1852_v26  ;;  %1667 = vmatmul.msk.bf16.gmra.mxu1 %vm154_vm0, %v1851_v12  ;;  %v1700_v12 = vld [vmem:[#allocation3 + $0x18] sm:$0xf0] }
  0x50   :  { %1676 = vmatmul.msk.bf16.gmra.mxu2 %vm154_vm0, %v1852_v26  ;;  %v2331_v13 = vor.u32 %v1865_v6, %v1700_v12  ;;  %768 = vmatpush.bf16.msrb.mxu1 %v2314_v60 }
  0x51   :  { %1684 = vmatmul.msk.bf16.gmra.mxu3 %vm154_vm0, %v1852_v26 }
  0x52   :  { %688 = vmatpush.bf16.msrb.mxu3 %v2331_v13  ;;  %755 = vmatpush.bf16.msra.mxu0 %v2303_v52 }
  0x54   :  { %769 = vmatpush.bf16.msrb.mxu1 %v2341_v17 }
  0x56   :  { %790 = vmatpush.bf16.msra.mxu3 %v2197_v33 }
  0x5a   :  { %791 = vmatpush.bf16.msra.mxu3 %v2216_v47 }
  0x5e   :  { %792 = vmatpush.bf16.msra.mxu3 %v2235_v59 }
  0x5f   :  { %1661 = vmatmul.msk.bf16.gmra.mxu0 %vm154_vm0, %v1853_v53  ;;  %1668 = vmatmul.msk.bf16.gmra.mxu1 %vm154_vm0, %v1852_v26 }
  0x60   :  { %1677 = vmatmul.msk.bf16.gmra.mxu2 %vm154_vm0, %v1853_v53 }
  0x61   :  { %1685 = vmatmul.msk.bf16.gmra.mxu3 %vm154_vm0, %v1853_v53 }
  0x62   :  { %793 = vmatpush.bf16.msra.mxu3 %v2254_v8 }
  0x66   :  { %794 = vmatpush.bf16.msra.mxu3 %v2273_v22 }
  0x6a   :  { %795 = vmatpush.bf16.msra.mxu3 %v2295_v44 }
  0x6e   :  { %796 = vmatpush.bf16.msra.mxu3 %v2319_v2 }
  0x6f   :  { %1662 = vmatmul.msk.bf16.gmra.mxu0 %vm154_vm0, %v1854_v9  ;;  %1669 = vmatmul.msk.bf16.gmra.mxu1 %vm154_vm0, %v1853_v53 }
  0x70   :  { %1678 = vmatmul.msk.bf16.gmra.mxu2 %vm154_vm0, %v1854_v9 }
  0x71   :  { %1686 = vmatmul.msk.bf16.gmra.mxu3 %vm154_vm0, %v1854_v9 }
  0x72   :  { %797 = vmatpush.bf16.msra.mxu3 %v2331_v13 }
  0x7f   :  { %1670 = vmatmul.msk.bf16.gmra.mxu1 %vm154_vm0, %v1854_v9  ;;  %647 = vmatmul.bf16.vlgmr.msrb.gmra.mxu0 %v2100_v18 }
  0x80   :  { %1679 = vmatmul.msk.bf16.gmra.mxu2 %vm154_vm0, %v2184_v20  ;;  %857 = vmatpush.bf16.msrb.mxu0 %v2208_v38 }
  0x81   :  { %1687 = vmatmul.msk.bf16.gmra.mxu3 %vm154_vm0, %v2184_v20 }
  0x84   :  { %858 = vmatpush.bf16.msrb.mxu0 %v2218_v49 }
  0x88   :  { %859 = vmatpush.bf16.msrb.mxu0 %v2238_v62 }
  0x8c   :  { %v2375_v19 = vpop.f32.mrf.mxu0  ;;  %v2377_v23 = vpop.f32.mrf.mxu1  ;;  %860 = vmatpush.bf16.msrb.mxu0 %v2257_v11 }
  0x8d   :  { %2932 = vst [vmem:[#allocation6_spill] sm:$0xff] %v2377_v23 }
  0x8f   :  { %1671 = vmatmul.msk.bf16.gmra.mxu1 %vm154_vm0, %v2184_v20 }
  0x90   :  { %675 = vmatmul.bf16.vlgmr.msrb.gmra.mxu2 %v2100_v18  ;;  %861 = vmatpush.bf16.msrb.mxu0 %v2276_v25 }
  0x91   :  { %689 = vmatmul.bf16.vlgmr.msrb.gmra.mxu3 %v2100_v18  ;;  %885 = vmatpush.bf16.msrb.mxu2 %v2195_v30 }
  0x92   :  { %899 = vmatpush.bf16.msrb.mxu3 %v2197_v33 }
  0x93   :  { %v2388_v24 = vpop.f32.mrf.mxu2 }
  0x94   :  { %v2390_v26 = vpop.f32.mrf.mxu3  ;;  %v2392_v27 = vpop.f32.mrf.mxu0  ;;  %862 = vmatpush.bf16.msrb.mxu0 %v2292_v39 }
  0x95   :  { %v2394_v28 = vpop.f32.mrf.mxu1  ;;  %886 = vmatpush.bf16.msrb.mxu2 %v2210_v42 }
  0x96   :  { %2933 = vst [vmem:[#allocation7_spill] sm:$0xff] %v2394_v28  ;;  %900 = vmatpush.bf16.msrb.mxu3 %v2216_v47 }
  0x98   :  { %863 = vmatpush.bf16.msrb.mxu0 %v2299_v48 }
  0x99   :  { %887 = vmatpush.bf16.msrb.mxu2 %v2233_v58 }
  0x9a   :  { %901 = vmatpush.bf16.msrb.mxu3 %v2235_v59 }
  0x9b   :  { %v2402_v20 = vpop.f32.mrf.mxu2 }
  0x9c   :  { %v2404_v29 = vpop.f32.mrf.mxu3  ;;  %v2406_v32 = vpop.f32.mrf.mxu0  ;;  %864 = vmatpush.bf16.msrb.mxu0 %v2303_v52 }
  0x9d   :  { %v2408_v35 = vpop.f32.mrf.mxu1  ;;  %888 = vmatpush.bf16.msrb.mxu2 %v2252_v7 }
  0x9e   :  { %902 = vmatpush.bf16.msrb.mxu3 %v2254_v8 }
  0x9f   :  { %661 = vmatmul.bf16.vlgmr.msra.gmra.mxu1 %v2100_v18 }
  0xa0   :  { %871 = vmatpush.bf16.msra.mxu1 %v2202_v34 }
  0xa1   :  { %889 = vmatpush.bf16.msrb.mxu2 %v2271_v21 }
  0xa2   :  { %903 = vmatpush.bf16.msrb.mxu3 %v2273_v22 }
  0xa3   :  { %v2416_v36 = vpop.f32.mrf.mxu2 }
  0xa4   :  { %v2418_v40 = vpop.f32.mrf.mxu3  ;;  %v2420_v41 = vpop.f32.mrf.mxu0  ;;  %872 = vmatpush.bf16.msra.mxu1 %v2214_v46 }
  0xa5   :  { %2934 = vst [vmem:[#allocation8_spill] sm:$0xff] %v2418_v40  ;;  %v2422_v43 = vpop.f32.mrf.mxu1  ;;  %890 = vmatpush.bf16.msrb.mxu2 %v2290_v37 }
  0xa6   :  { %904 = vmatpush.bf16.msrb.mxu3 %v2295_v44 }
  0xa8   :  { %873 = vmatpush.bf16.msra.mxu1 %v2231_v54 }
  0xa9   :  { %891 = vmatpush.bf16.msrb.mxu2 %v2317_v1 }
  0xaa   :  { %905 = vmatpush.bf16.msrb.mxu3 %v2319_v2 }
  0xab   :  { %v2430_v45 = vpop.f32.mrf.mxu2 }
  0xac   :  { %2935 = vst [vmem:[#allocation9_spill] sm:$0xff] %v2430_v45  ;;  %v2432_v50 = vpop.f32.mrf.mxu3  ;;  %v2434_v51 = vpop.f32.mrf.mxu0  ;;  %874 = vmatpush.bf16.msra.mxu1 %v2250_v3 }
  0xad   :  { %2936 = vst [vmem:[#allocation10_spill] sm:$0xff] %v2432_v50  ;;  %v2436_v53 = vpop.f32.mrf.mxu1  ;;  %892 = vmatpush.bf16.msrb.mxu2 %v2329_v10 }
  0xae   :  { %2937 = vst [vmem:[#allocation11_spill] sm:$0xff] %v2434_v51  ;;  %906 = vmatpush.bf16.msrb.mxu3 %v2331_v13 }
  0xb0   :  { %875 = vmatpush.bf16.msra.mxu1 %v2269_v16 }
  0xb3   :  { %v2442_v55 = vpop.f32.mrf.mxu2 }
  0xb4   :  { %2938 = vst [vmem:[#allocation12_spill] sm:$0xff] %v2442_v55  ;;  %v2444_v56 = vpop.f32.mrf.mxu3  ;;  %v2446_v57 = vpop.f32.mrf.mxu0  ;;  %876 = vmatpush.bf16.msra.mxu1 %v2288_v31 }
  0xb5   :  { %2939 = vst [vmem:[#allocation13_spill] sm:$0xff] %v2444_v56  ;;  %v2448_v61 = vpop.f32.mrf.mxu1 }
  0xb6   :  { %2940 = vst [vmem:[#allocation14_spill] sm:$0xff] %v2446_v57 }
  0xb7   :  { %2941 = vst [vmem:[#allocation15_spill] sm:$0xff] %v2448_v61 }
  0xb8   :  { %877 = vmatpush.bf16.msra.mxu1 %v2314_v60 }
  0xbb   :  { %v2452_v63 = vpop.f32.mrf.mxu2 }
  0xbc   :  { %2942 = vst [vmem:[#allocation16_spill] sm:$0xff] %v2452_v63  ;;  %v2454_v0 = vpop.f32.mrf.mxu3  ;;  %v2456_v4 = vpop.f32.mrf.mxu0  ;;  %878 = vmatpush.bf16.msra.mxu1 %v2341_v17 }
  0xbd   :  { %2943 = vst [vmem:[#allocation17_spill] sm:$0xff] %v2454_v0  ;;  %v2458_v5 = vpop.f32.mrf.mxu1 }
  0xbe   :  { %2944 = vst [vmem:[#allocation18_spill] sm:$0xff] %v2456_v4 }
  0xbf   :  { %2945 = vst [vmem:[#allocation19_spill] sm:$0xff] %v2458_v5 }
  0xc3   :  { %v2461_v6 = vpop.f32.mrf.mxu2 }
  0xc4   :  { %2946 = vst [vmem:[#allocation20_spill] sm:$0xff] %v2461_v6  ;;  %v2463_v9 = vpop.f32.mrf.mxu3  ;;  %v2465_v12 = vpop.f32.mrf.mxu0 }
  0xc5   :  { %2947 = vst [vmem:[#allocation21_spill] sm:$0xff] %v2463_v9  ;;  %v2467_v14 = vpop.f32.mrf.mxu1 }
  0xc6   :  { %2948 = vst [vmem:[#allocation22_spill] sm:$0xff] %v2465_v12 }
  0xc7   :  { %2949 = vst [vmem:[#allocation23_spill] sm:$0xff] %v2467_v14 }
  0xcb   :  { %v2469_v15 = vpop.f32.mrf.mxu2 }
  0xcc   :  { %2950 = vst [vmem:[#allocation24_spill] sm:$0xff] %v2469_v15  ;;  %v2471_v18 = vpop.f32.mrf.mxu3  ;;  %v2473_v28 = vpop.f32.mrf.mxu0 }
  0xcd   :  { %2951 = vst [vmem:[#allocation25_spill] sm:$0xff] %v2471_v18  ;;  %v2475_v23 = vpop.f32.mrf.mxu1 }
  0xce   :  { %2952 = vst [vmem:[#allocation26_spill] sm:$0xff] %v2473_v28 }
  0xcf   :  { %2953 = vst [vmem:[#allocation27_spill] sm:$0xff] %v2475_v23 }
  0xd3   :  { %v2477_v4 = vpop.f32.mrf.mxu2 }
  0xd4   :  { %2954 = vst [vmem:[#allocation28_spill] sm:$0xff] %v2477_v4  ;;  %v2479_v0 = vpop.f32.mrf.mxu3  ;;  %v2481_v63 = vpop.f32.mrf.mxu0 }
  0xd5   :  { %2955 = vst [vmem:[#allocation29_spill] sm:$0xff] %v2479_v0  ;;  %v2483_v6 = vpop.f32.mrf.mxu1 }
  0xd6   :  { %2956 = vst [vmem:[#allocation30_spill] sm:$0xff] %v2481_v63 }
  0xd7   :  { %2957 = vst [vmem:[#allocation31_spill] sm:$0xff] %v2483_v6 }
  0xdb   :  { %v2485_v9 = vpop.f32.mrf.mxu2 }
  0xdc   :  { %2958 = vst [vmem:[#allocation32_spill] sm:$0xff] %v2485_v9  ;;  %v2487_v12 = vpop.f32.mrf.mxu3  ;;  %v2489_v56 = vpop.f32.mrf.mxu0 }
  0xdd   :  { %2959 = vst [vmem:[#allocation33_spill] sm:$0xff] %v2487_v12  ;;  %v2491_v15 = vpop.f32.mrf.mxu1 }
  0xde   :  { %2960 = vst [vmem:[#allocation34_spill] sm:$0xff] %v2489_v56 }
  0xdf   :  { %2961 = vst [vmem:[#allocation35_spill] sm:$0xff] %v2491_v15 }
  0xe3   :  { %v2493_v18 = vpop.f32.mrf.mxu2 }
  0xe4   :  { %2962 = vst [vmem:[#allocation36_spill] sm:$0xff] %v2493_v18  ;;  %v2495_v28 = vpop.f32.mrf.mxu3  ;;  %v2499_v4 = vpop.f32.mrf.mxu0 }
  0xe5   :  { %2963 = vst [vmem:[#allocation37_spill] sm:$0xff] %v2495_v28  ;;  %v2497_v23 = vpop.f32.mrf.mxu1 }
  0xe6   :  { %2964 = vst [vmem:[#allocation38_spill] sm:$0xff] %v2497_v23 }
  0xe7   :  { %2965 = vst [vmem:[#allocation39_spill] sm:$0xff] %v2499_v4 }
  0xeb   :  { %v2501_v0 = vpop.f32.mrf.mxu2 }
  0xec   :  { %2966 = vst [vmem:[#allocation40_spill] sm:$0xff] %v2501_v0  ;;  %v2503_v63 = vpop.f32.mrf.mxu3  ;;  %v2507_v9 = vpop.f32.mrf.mxu0 }
  0xed   :  { %2967 = vst [vmem:[#allocation41_spill] sm:$0xff] %v2503_v63  ;;  %v2505_v6 = vpop.f32.mrf.mxu1  ;;  %v64_v63 = vld [vmem:[%s2928_s3] sm:$0xf] }
  0xee   :  { %2968 = vst [vmem:[#allocation42_spill] sm:$0xff] %v2505_v6  ;;  %v2526_v0 = vperm.slane %v64_v63, 0  ;;  %v2540_v14 = vperm.slane %v64_v63, 2 }
  0xef   :  { %2969 = vst [vmem:[#allocation43_spill] sm:$0xff] %v2507_v9 }
  0xf3   :  { %v2509_v12 = vpop.f32.mrf.mxu2 }
  0xf4   :  { %2970 = vst [vmem:[#allocation44_spill] sm:$0xff] %v2509_v12  ;;  %v2511_v56 = vpop.f32.mrf.mxu3  ;;  %v2515_v18 = vpop.f32.mrf.mxu0 }
  0xf5   :  { %2971 = vst [vmem:[#allocation45_spill] sm:$0xff] %v2511_v56  ;;  %v2513_v15 = vpop.f32.mrf.mxu1  ;;  %v189_v56 = vadd.f32 %v2375_v19, %v2526_v0 }
  0xf6   :  { %2972 = vst [vmem:[#allocation46_spill] sm:$0xff] %v2513_v15 }
  0xf7   :  { %2973 = vst [vmem:[#allocation47_spill] sm:$0xff] %v2515_v18 }
  0xfb   :  { %v2517_v28 = vpop.f32.mrf.mxu2 }
  0xfc   :  { %2974 = vst [vmem:[#allocation48_spill] sm:$0xff] %v2517_v28  ;;  %v2521_v4 = vpop.f32.mrf.mxu3  ;;  %v648_v9 = vpop.f32.mrf.mxu0 }
  0xfd   :  { %v2519_v23 = vpop.f32.mrf.mxu1  ;;  %2976 = vst [vmem:[#allocation50_spill] sm:$0xff] %v2521_v4  ;;  %v695_v18 = vadd.f32 %v648_v9, %v189_v56  ;;  %v2548_v56 = vperm.slane %v64_v63, 1 }
  0xfe   :  { %2975 = vst [vmem:[#allocation49_spill] sm:$0xff] %v2519_v23 }
  0xff   :  { %v703_v23 = vmul.f32 0.5, %v695_v18 }
 0x101   :  { %1911 = vtanh.f32 %v703_v23  ;;  %v238_v23 = vadd.f32 %v2408_v35, %v2548_v56 }
 0x103   :  { %v2528_v12 = vpop.f32.mrf.mxu2 }
 0x104   :  { %2977 = vst [vmem:[#allocation51_spill] sm:$0xff] %v2528_v12  ;;  %v2534_v28 = vpop.f32.mrf.mxu3  ;;  %v287_v12 = vadd.f32 %v2388_v24, %v2540_v14  ;;  %v650_v18 = vpop.f32.mrf.mxu0 }
 0x105   :  { %v2532_v15 = vpop.f32.mrf.mxu1  ;;  %2979 = vst [vmem:[#allocation53_spill] sm:$0xff] %v2534_v28 }
 0x106   :  { %2978 = vst [vmem:[#allocation52_spill] sm:$0xff] %v2532_v15 }
 0x107   :  { %v1912_v19 = vpop.eup %1911 }
 0x108   :  { %v707_v9 = vadd.f32 1.0, %v1912_v19  ;;  %v240_v19 = vadd.f32 %v2422_v43, %v2548_v56 }
 0x10b   :  { %v2536_v6 = vpop.f32.mrf.mxu2 }
 0x10c   :  { %2980 = vst [vmem:[#allocation54_spill] sm:$0xff] %v2536_v6  ;;  %v2542_v57 = vpop.f32.mrf.mxu3  ;;  %v191_v6 = vadd.f32 %v2392_v27, %v2526_v0 }
 0x10d   :  { %v2538_v4 = vpop.f32.mrf.mxu1  ;;  %2982 = vst [vmem:[#allocation56_spill] sm:$0xff] %v2542_v57  ;;  %v709_v57 = vmul.f32 0.5, %v707_v9  ;;  %v289_v9 = vadd.f32 %v2402_v20, %v2540_v14 }
 0x10e   :  { %2981 = vst [vmem:[#allocation55_spill] sm:$0xff] %v2538_v4  ;;  %v699_v51 = vadd.f32 %v650_v18, %v191_v6 }
 0x113   :  { %v676_v55 = vpop.f32.mrf.mxu2 }
 0x114   :  { %v697_v5 = vadd.f32 %v676_v55, %v287_v12  ;;  %v690_v28 = vpop.f32.mrf.mxu3 }
 0x115   :  { %v2546_v15 = vpop.f32.mrf.mxu1 }
 0x116   :  { %2983 = vst [vmem:[#allocation57_spill] sm:$0xff] %v2546_v15  ;;  %1913 = vtanh.f32 %v697_v5  ;;  %v2554_v15 = vperm.slane %v64_v63, 3  ;;  %v704_v5 = vmul.f32 0.5, %v699_v51 }
 0x118   :  { %v336_v35 = vadd.f32 %v2390_v26, %v2554_v15  ;;  %v338_v63 = vadd.f32 %v2404_v29, %v2554_v15 }
 0x11a   :  { %v698_v51 = vadd.f32 %v690_v28, %v336_v35 }
 0x11b   :  { %v678_v45 = vpop.f32.mrf.mxu2 }
 0x11c   :  { %v1914_v4 = vpop.eup %1913  ;;  %v692_v6 = vpop.f32.mrf.mxu3  ;;  %v701_v18 = vadd.f32 %v678_v45, %v289_v9  ;;  %v721_v40 = vmul.f32 0.5, %v698_v51 }
 0x11d   :  { %v662_v24 = vpop.f32.mrf.mxu1  ;;  %v731_v50 = vmul.f32 %v1914_v4, %v709_v57 }
 0x11e   :  { %v696_v55 = vadd.f32 %v662_v24, %v238_v23  ;;  %v702_v24 = vadd.f32 %v692_v6, %v338_v63 }
 0x120   :  { %v711_v12 = vmul.f32 0.5, %v696_v55  ;;  %v722_v26 = vmul.f32 0.5, %v702_v24 }
 0x122   :  { %1915 = vtanh.f32 %v711_v12 }
 0x123   :  { %1917 = vtanh.f32 %v704_v5 }
 0x125   :  { %v664_v27 = vpop.f32.mrf.mxu1 }
 0x126   :  { %v700_v57 = vadd.f32 %v664_v27, %v240_v19 }
 0x128   :  { %v1916_v4 = vpop.eup %1915  ;;  %v712_v23 = vmul.f32 0.5, %v700_v57 }
 0x129   :  { %v715_v43 = vadd.f32 1.0, %v1916_v4  ;;  %v1918_v12 = vpop.eup %1917 }
 0x12a   :  { %1919 = vtanh.f32 %v712_v23  ;;  %v708_v20 = vadd.f32 1.0, %v1918_v12  ;;  %v243_v12 = vadd.f32 %v2436_v53, %v2548_v56 }
 0x12b   :  { %v717_v55 = vmul.f32 0.5, %v715_v43  ;;  %1921 = vtanh.f32 %v701_v18 }
 0x12c   :  { %1923 = vtanh.f32 %v721_v40  ;;  %v710_v28 = vmul.f32 0.5, %v708_v20 }
 0x12d   :  { %v729_v61 = vmul.f32 0.0, %v717_v55  ;;  %1925 = vtanh.f32 %v722_v26  ;;  %v194_v55 = vadd.f32 %v2406_v32, %v2526_v0 }
 0x12f   :  { %v2564_v5 = vadd.f32 %v731_v50, %v729_v61 }
 0x130   :  { %v1920_v19 = vpop.eup %1919 }
 0x131   :  { %v716_v29 = vadd.f32 1.0, %v1920_v19  ;;  %v1922_v27 = vpop.eup %1921  ;;  %1927 = vtanh.f32 %v2564_v5 }
 0x132   :  { %v732_v35 = vmul.f32 %v1922_v27, %v710_v28  ;;  %v1924_v6 = vpop.eup %1923 }
 0x133   :  { %v718_v45 = vmul.f32 0.5, %v716_v29  ;;  %v1926_v57 = vpop.eup %1925  ;;  %v725_v4 = vadd.f32 1.0, %v1924_v6 }
 0x134   :  { %v726_v50 = vadd.f32 1.0, %v1926_v57 }
 0x135   :  { %v730_v9 = vmul.f32 0.0, %v718_v45  ;;  %v727_v51 = vmul.f32 0.5, %v725_v4  ;;  %v292_v45 = vadd.f32 %v2416_v36, %v2540_v14 }
 0x136   :  { %v728_v40 = vmul.f32 0.5, %v726_v50 }
 0x137   :  { %v2567_v63 = vadd.f32 %v732_v35, %v730_v9  ;;  %v1928_v61 = vpop.eup %1927  ;;  %v196_v35 = vadd.f32 %v2420_v41, %v2526_v0  ;;  %v2984_v9 = vld [vmem:[#allocation15_spill] sm:$0xff] }
 0x138   :  { %v737_v23 = vmul.f32 %v1928_v61, %v727_v51  ;;  %v245_v32 = vadd.f32 %v2984_v9, %v2548_v56 }
 0x139   :  { %1929 = vtanh.f32 %v2567_v63 }
 0x13f   :  { %v1930_v18 = vpop.eup %1929 }
 0x140   :  { %v738_v24 = vmul.f32 %v1930_v18, %v728_v40  ;;  %v2985_v40 = vld [vmem:[#allocation8_spill] sm:$0xff] }
 0x141   :  { %v341_v18 = vadd.f32 %v2985_v40, %v2554_v15 }
 0x142   :  { %v747_v43 = vpack.c.bf16 %v738_v24, %v737_v23 }
 0x144   :  { %756 = vmatmul.bf16.vlgmr.msra.gmra.mxu0 %v747_v43  ;;  %770 = vmatmul.bf16.vlgmr.msrb.gmra.mxu1 %v747_v43 }
 0x145   :  { %784 = vmatmul.bf16.vlgmr.msra.gmra.mxu2 %v747_v43  ;;  %798 = vmatmul.bf16.vlgmr.msra.gmra.mxu3 %v747_v43 }
 0x146   :  { %966 = vmatpush.bf16.msra.mxu0 %v2208_v38  ;;  %980 = vmatpush.bf16.msrb.mxu1 %v2202_v34 }
 0x147   :  { %994 = vmatpush.bf16.msra.mxu2 %v2195_v30  ;;  %1008 = vmatpush.bf16.msra.mxu3 %v2197_v33 }
 0x14a   :  { %967 = vmatpush.bf16.msra.mxu0 %v2218_v49  ;;  %981 = vmatpush.bf16.msrb.mxu1 %v2214_v46 }
 0x14b   :  { %995 = vmatpush.bf16.msra.mxu2 %v2210_v42  ;;  %1009 = vmatpush.bf16.msra.mxu3 %v2216_v47 }
 0x14e   :  { %968 = vmatpush.bf16.msra.mxu0 %v2238_v62  ;;  %982 = vmatpush.bf16.msrb.mxu1 %v2231_v54 }
 0x14f   :  { %996 = vmatpush.bf16.msra.mxu2 %v2233_v58  ;;  %1010 = vmatpush.bf16.msra.mxu3 %v2235_v59 }
 0x152   :  { %969 = vmatpush.bf16.msra.mxu0 %v2257_v11  ;;  %983 = vmatpush.bf16.msrb.mxu1 %v2250_v3 }
 0x153   :  { %997 = vmatpush.bf16.msra.mxu2 %v2252_v7  ;;  %1011 = vmatpush.bf16.msra.mxu3 %v2254_v8 }
 0x156   :  { %970 = vmatpush.bf16.msra.mxu0 %v2276_v25  ;;  %984 = vmatpush.bf16.msrb.mxu1 %v2269_v16 }
 0x157   :  { %998 = vmatpush.bf16.msra.mxu2 %v2271_v21  ;;  %1012 = vmatpush.bf16.msra.mxu3 %v2273_v22 }
 0x15a   :  { %971 = vmatpush.bf16.msra.mxu0 %v2292_v39  ;;  %985 = vmatpush.bf16.msrb.mxu1 %v2288_v31 }
 0x15b   :  { %999 = vmatpush.bf16.msra.mxu2 %v2290_v37  ;;  %1013 = vmatpush.bf16.msra.mxu3 %v2295_v44 }
 0x15e   :  { %972 = vmatpush.bf16.msra.mxu0 %v2299_v48  ;;  %986 = vmatpush.bf16.msrb.mxu1 %v2314_v60 }
 0x15f   :  { %1000 = vmatpush.bf16.msra.mxu2 %v2317_v1  ;;  %1014 = vmatpush.bf16.msra.mxu3 %v2319_v2 }
 0x162   :  { %973 = vmatpush.bf16.msra.mxu0 %v2303_v52  ;;  %987 = vmatpush.bf16.msrb.mxu1 %v2341_v17 }
 0x163   :  { %1001 = vmatpush.bf16.msra.mxu2 %v2329_v10  ;;  %1015 = vmatpush.bf16.msra.mxu3 %v2331_v13 }
 0x1c1   :  { %v757_v26 = vpop.f32.mrf.mxu0  ;;  %v771_v20 = vpop.f32.mrf.mxu1 }
 0x1c2   :  { %v804_v19 = vadd.f32 %v757_v26, %v194_v55  ;;  %v805_v29 = vadd.f32 %v771_v20, %v243_v12  ;;  %v2986_v26 = vld [vmem:[#allocation9_spill] sm:$0xff] }
 0x1c3   :  { %v294_v20 = vadd.f32 %v2986_v26, %v2540_v14 }
 0x1c4   :  { %v812_v27 = vmul.f32 0.5, %v804_v19  ;;  %v820_v28 = vmul.f32 0.5, %v805_v29  ;;  %v2987_v19 = vld [vmem:[#allocation10_spill] sm:$0xff] }
 0x1c5   :  { %v343_v29 = vadd.f32 %v2987_v19, %v2554_v15 }
 0x1c6   :  { %1931 = vtanh.f32 %v812_v27 }
 0x1c7   :  { %1933 = vtanh.f32 %v820_v28 }
 0x1c8   :  { %v785_v6 = vpop.f32.mrf.mxu2  ;;  %v799_v57 = vpop.f32.mrf.mxu3 }
 0x1c9   :  { %v806_v53 = vadd.f32 %v785_v6, %v292_v45  ;;  %v759_v4 = vpop.f32.mrf.mxu0  ;;  %v773_v50 = vpop.f32.mrf.mxu1  ;;  %v807_v41 = vadd.f32 %v799_v57, %v341_v18 }
 0x1ca   :  { %v808_v61 = vadd.f32 %v759_v4, %v196_v35  ;;  %v809_v51 = vadd.f32 %v773_v50, %v245_v32 }
 0x1cb   :  { %1935 = vtanh.f32 %v806_v53  ;;  %v830_v32 = vmul.f32 0.5, %v807_v41 }
 0x1cc   :  { %v1932_v23 = vpop.eup %1931  ;;  %v813_v36 = vmul.f32 0.5, %v808_v61  ;;  %v821_v24 = vmul.f32 0.5, %v809_v51 }
 0x1cd   :  { %v1934_v43 = vpop.eup %1933  ;;  %v816_v55 = vadd.f32 1.0, %v1932_v23 }
 0x1ce   :  { %v824_v12 = vadd.f32 1.0, %v1934_v43  ;;  %1937 = vtanh.f32 %v813_v36 }
 0x1cf   :  { %v818_v27 = vmul.f32 0.5, %v816_v55  ;;  %1939 = vtanh.f32 %v821_v24 }
 0x1d0   :  { %v826_v28 = vmul.f32 0.5, %v824_v12  ;;  %v787_v45 = vpop.f32.mrf.mxu2  ;;  %v801_v35 = vpop.f32.mrf.mxu3 }
 0x1d1   :  { %v1936_v9 = vpop.eup %1935  ;;  %v810_v6 = vadd.f32 %v787_v45, %v294_v20  ;;  %v811_v53 = vadd.f32 %v801_v35, %v343_v29 }
 0x1d2   :  { %v838_v4 = vmul.f32 %v826_v28, %v2564_v5  ;;  %v840_v57 = vmul.f32 %v1936_v9, %v818_v27 }
 0x1d3   :  { %1941 = vtanh.f32 %v810_v6  ;;  %v831_v50 = vmul.f32 0.5, %v811_v53  ;;  %v2989_v53 = vld [vmem:[#allocation19_spill] sm:$0xff] }
 0x1d4   :  { %v1938_v61 = vpop.eup %1937  ;;  %v2619_v51 = vadd.f32 %v840_v57, %v838_v4  ;;  %1943 = vtanh.f32 %v830_v32  ;;  %v248_v4 = vadd.f32 %v2989_v53, %v2548_v56 }
 0x1d5   :  { %v1940_v40 = vpop.eup %1939  ;;  %v817_v18 = vadd.f32 1.0, %v1938_v61  ;;  %1945 = vtanh.f32 %v831_v50 }
 0x1d6   :  { %v825_v23 = vadd.f32 1.0, %v1940_v40  ;;  %1947 = vtanh.f32 %v2619_v51 }
 0x1d7   :  { %v819_v36 = vmul.f32 0.5, %v817_v18 }
 0x1d8   :  { %v827_v24 = vmul.f32 0.5, %v825_v23 }
 0x1d9   :  { %v1942_v43 = vpop.eup %1941 }
 0x1da   :  { %v839_v55 = vmul.f32 %v827_v24, %v2567_v63  ;;  %v841_v41 = vmul.f32 %v1942_v43, %v819_v36  ;;  %v1944_v12 = vpop.eup %1943  ;;  %v2988_v63 = vld [vmem:[#allocation11_spill] sm:$0xff]  ;;  %v2990_v36 = vld [vmem:[#allocation12_spill] sm:$0xff]  ;;  %v2991_v43 = vld [vmem:[#allocation14_spill] sm:$0xff] }
 0x1db   :  { %v1946_v26 = vpop.eup %1945  ;;  %v834_v20 = vadd.f32 1.0, %v1944_v12  ;;  %v199_v6 = vadd.f32 %v2988_v63, %v2526_v0  ;;  %v297_v24 = vadd.f32 %v2990_v36, %v2540_v14 }
 0x1dc   :  { %v2623_v5 = vadd.f32 %v841_v41, %v839_v55  ;;  %v835_v19 = vadd.f32 1.0, %v1946_v26  ;;  %v1948_v29 = vpop.eup %1947  ;;  %v201_v55 = vadd.f32 %v2991_v43, %v2526_v0  ;;  %v2992_v41 = vld [vmem:[#allocation23_spill] sm:$0xff] }
 0x1dd   :  { %v836_v27 = vmul.f32 0.5, %v834_v20  ;;  %v250_v12 = vadd.f32 %v2992_v41, %v2548_v56 }
 0x1de   :  { %1949 = vtanh.f32 %v2623_v5  ;;  %v837_v28 = vmul.f32 0.5, %v835_v19 }
 0x1df   :  { %v846_v35 = vmul.f32 %v1948_v29, %v836_v27 }
 0x1e4   :  { %v1950_v45 = vpop.eup %1949 }
 0x1e5   :  { %v847_v9 = vmul.f32 %v1950_v45, %v837_v28 }
 0x1e7   :  { %v856_v32 = vpack.c.bf16 %v847_v9, %v846_v35  ;;  %v2993_v35 = vld [vmem:[#allocation13_spill] sm:$0xff] }
 0x1e8   :  { %v346_v9 = vadd.f32 %v2993_v35, %v2554_v15 }
 0x1e9   :  { %865 = vmatmul.bf16.vlgmr.msrb.gmra.mxu0 %v856_v32  ;;  %879 = vmatmul.bf16.vlgmr.msra.gmra.mxu1 %v856_v32 }
 0x1ea   :  { %893 = vmatmul.bf16.vlgmr.msrb.gmra.mxu2 %v856_v32  ;;  %907 = vmatmul.bf16.vlgmr.msrb.gmra.mxu3 %v856_v32 }
 0x1eb   :  { %1075 = vmatpush.bf16.msrb.mxu0 %v2208_v38  ;;  %1089 = vmatpush.bf16.msra.mxu1 %v2202_v34 }
 0x1ec   :  { %1103 = vmatpush.bf16.msrb.mxu2 %v2195_v30  ;;  %1117 = vmatpush.bf16.msrb.mxu3 %v2197_v33 }
 0x1ef   :  { %1076 = vmatpush.bf16.msrb.mxu0 %v2218_v49  ;;  %1090 = vmatpush.bf16.msra.mxu1 %v2214_v46 }
 0x1f0   :  { %1104 = vmatpush.bf16.msrb.mxu2 %v2210_v42  ;;  %1118 = vmatpush.bf16.msrb.mxu3 %v2216_v47 }
 0x1f3   :  { %1077 = vmatpush.bf16.msrb.mxu0 %v2238_v62  ;;  %1091 = vmatpush.bf16.msra.mxu1 %v2231_v54 }
 0x1f4   :  { %1105 = vmatpush.bf16.msrb.mxu2 %v2233_v58  ;;  %1119 = vmatpush.bf16.msrb.mxu3 %v2235_v59 }
 0x1f7   :  { %1078 = vmatpush.bf16.msrb.mxu0 %v2257_v11  ;;  %1092 = vmatpush.bf16.msra.mxu1 %v2250_v3 }
 0x1f8   :  { %1106 = vmatpush.bf16.msrb.mxu2 %v2252_v7  ;;  %1120 = vmatpush.bf16.msrb.mxu3 %v2254_v8 }
 0x1fb   :  { %1079 = vmatpush.bf16.msrb.mxu0 %v2276_v25  ;;  %1093 = vmatpush.bf16.msra.mxu1 %v2269_v16 }
 0x1fc   :  { %1107 = vmatpush.bf16.msrb.mxu2 %v2271_v21  ;;  %1121 = vmatpush.bf16.msrb.mxu3 %v2273_v22 }
 0x1ff   :  { %1080 = vmatpush.bf16.msrb.mxu0 %v2292_v39  ;;  %1094 = vmatpush.bf16.msra.mxu1 %v2288_v31 }
 0x200   :  { %1108 = vmatpush.bf16.msrb.mxu2 %v2290_v37  ;;  %1122 = vmatpush.bf16.msrb.mxu3 %v2295_v44 }
 0x203   :  { %1081 = vmatpush.bf16.msrb.mxu0 %v2299_v48  ;;  %1095 = vmatpush.bf16.msra.mxu1 %v2314_v60 }
 0x204   :  { %1109 = vmatpush.bf16.msrb.mxu2 %v2317_v1  ;;  %1123 = vmatpush.bf16.msrb.mxu3 %v2319_v2 }
 0x207   :  { %1082 = vmatpush.bf16.msrb.mxu0 %v2303_v52  ;;  %1096 = vmatpush.bf16.msra.mxu1 %v2341_v17 }
 0x208   :  { %1110 = vmatpush.bf16.msrb.mxu2 %v2329_v10  ;;  %1124 = vmatpush.bf16.msrb.mxu3 %v2331_v13 }
 0x266   :  { %v866_v57 = vpop.f32.mrf.mxu0  ;;  %v880_v50 = vpop.f32.mrf.mxu1 }
 0x267   :  { %v913_v61 = vadd.f32 %v866_v57, %v199_v6  ;;  %v914_v40 = vadd.f32 %v880_v50, %v248_v4 }
 0x269   :  { %v921_v18 = vmul.f32 0.5, %v913_v61  ;;  %v929_v23 = vmul.f32 0.5, %v914_v40  ;;  %v2994_v61 = vld [vmem:[#allocation16_spill] sm:$0xff] }
 0x26a   :  { %v299_v40 = vadd.f32 %v2994_v61, %v2540_v14 }
 0x26b   :  { %1951 = vtanh.f32 %v921_v18  ;;  %v2995_v18 = vld [vmem:[#allocation17_spill] sm:$0xff] }
 0x26c   :  { %1953 = vtanh.f32 %v929_v23  ;;  %v348_v23 = vadd.f32 %v2995_v18, %v2554_v15 }
 0x26d   :  { %v894_v26 = vpop.f32.mrf.mxu2  ;;  %v908_v20 = vpop.f32.mrf.mxu3 }
 0x26e   :  { %v915_v19 = vadd.f32 %v894_v26, %v297_v24  ;;  %v868_v29 = vpop.f32.mrf.mxu0  ;;  %v882_v27 = vpop.f32.mrf.mxu1  ;;  %v916_v57 = vadd.f32 %v908_v20, %v346_v9 }
 0x26f   :  { %v917_v28 = vadd.f32 %v868_v29, %v201_v55  ;;  %v918_v45 = vadd.f32 %v882_v27, %v250_v12 }
 0x270   :  { %1955 = vtanh.f32 %v915_v19  ;;  %v939_v12 = vmul.f32 0.5, %v916_v57 }
 0x271   :  { %v1952_v32 = vpop.eup %1951  ;;  %v922_v63 = vmul.f32 0.5, %v917_v28  ;;  %v930_v6 = vmul.f32 0.5, %v918_v45 }
 0x272   :  { %v1954_v53 = vpop.eup %1953  ;;  %v925_v4 = vadd.f32 1.0, %v1952_v32 }
 0x273   :  { %v933_v50 = vadd.f32 1.0, %v1954_v53  ;;  %1957 = vtanh.f32 %v922_v63 }
 0x274   :  { %v927_v36 = vmul.f32 0.5, %v925_v4  ;;  %1959 = vtanh.f32 %v930_v6 }
 0x275   :  { %v935_v24 = vmul.f32 0.5, %v933_v50  ;;  %v896_v43 = vpop.f32.mrf.mxu2  ;;  %v910_v55 = vpop.f32.mrf.mxu3 }
 0x276   :  { %v1956_v41 = vpop.eup %1955  ;;  %v919_v26 = vadd.f32 %v896_v43, %v299_v40  ;;  %v920_v19 = vadd.f32 %v910_v55, %v348_v23 }
 0x277   :  { %v947_v29 = vmul.f32 %v935_v24, %v2619_v51  ;;  %v949_v20 = vmul.f32 %v1956_v41, %v927_v36 }
 0x278   :  { %1961 = vtanh.f32 %v919_v26  ;;  %v940_v27 = vmul.f32 0.5, %v920_v19  ;;  %v2997_v19 = vld [vmem:[#allocation27_spill] sm:$0xff] }
 0x279   :  { %v1958_v28 = vpop.eup %1957  ;;  %v2675_v45 = vadd.f32 %v949_v20, %v947_v29  ;;  %1963 = vtanh.f32 %v939_v12  ;;  %v253_v29 = vadd.f32 %v2997_v19, %v2548_v56 }
 0x27a   :  { %v1960_v35 = vpop.eup %1959  ;;  %v926_v9 = vadd.f32 1.0, %v1958_v28  ;;  %1965 = vtanh.f32 %v940_v27 }
 0x27b   :  { %v934_v32 = vadd.f32 1.0, %v1960_v35  ;;  %1967 = vtanh.f32 %v2675_v45 }
 0x27c   :  { %v928_v63 = vmul.f32 0.5, %v926_v9 }
 0x27d   :  { %v936_v6 = vmul.f32 0.5, %v934_v32 }
 0x27e   :  { %v1962_v53 = vpop.eup %1961 }
 0x27f   :  { %v948_v4 = vmul.f32 %v936_v6, %v2623_v5  ;;  %v950_v57 = vmul.f32 %v1962_v53, %v928_v63  ;;  %v1964_v50 = vpop.eup %1963  ;;  %v2996_v5 = vld [vmem:[#allocation18_spill] sm:$0xff]  ;;  %v2998_v63 = vld [vmem:[#allocation20_spill] sm:$0xff] }
 0x280   :  { %v1966_v61 = vpop.eup %1965  ;;  %v943_v40 = vadd.f32 1.0, %v1964_v50  ;;  %v204_v26 = vadd.f32 %v2996_v5, %v2526_v0  ;;  %v302_v6 = vadd.f32 %v2998_v63, %v2540_v14  ;;  %v2999_v53 = vld [vmem:[#allocation22_spill] sm:$0xff] }
 0x281   :  { %v2679_v51 = vadd.f32 %v950_v57, %v948_v4  ;;  %v944_v18 = vadd.f32 1.0, %v1966_v61  ;;  %v1968_v23 = vpop.eup %1967  ;;  %v206_v4 = vadd.f32 %v2999_v53, %v2526_v0  ;;  %v3000_v57 = vld [vmem:[#allocation31_spill] sm:$0xff] }
 0x282   :  { %v945_v36 = vmul.f32 0.5, %v943_v40  ;;  %v255_v50 = vadd.f32 %v3000_v57, %v2548_v56 }
 0x283   :  { %1969 = vtanh.f32 %v2679_v51  ;;  %v946_v24 = vmul.f32 0.5, %v944_v18 }
 0x284   :  { %v955_v55 = vmul.f32 %v1968_v23, %v945_v36 }
 0x289   :  { %v1970_v43 = vpop.eup %1969 }
 0x28a   :  { %v956_v41 = vmul.f32 %v1970_v43, %v946_v24 }
 0x28c   :  { %v965_v12 = vpack.c.bf16 %v956_v41, %v955_v55  ;;  %v3001_v55 = vld [vmem:[#allocation21_spill] sm:$0xff] }
 0x28d   :  { %v351_v41 = vadd.f32 %v3001_v55, %v2554_v15 }
 0x28e   :  { %974 = vmatmul.bf16.vlgmr.msra.gmra.mxu0 %v965_v12  ;;  %988 = vmatmul.bf16.vlgmr.msrb.gmra.mxu1 %v965_v12 }
 0x28f   :  { %1002 = vmatmul.bf16.vlgmr.msra.gmra.mxu2 %v965_v12  ;;  %1016 = vmatmul.bf16.vlgmr.msra.gmra.mxu3 %v965_v12 }
 0x290   :  { %1184 = vmatpush.bf16.msra.mxu0 %v2208_v38  ;;  %1198 = vmatpush.bf16.msrb.mxu1 %v2202_v34 }
 0x291   :  { %1212 = vmatpush.bf16.msra.mxu2 %v2195_v30  ;;  %1226 = vmatpush.bf16.msra.mxu3 %v2197_v33 }
 0x294   :  { %1185 = vmatpush.bf16.msra.mxu0 %v2218_v49  ;;  %1199 = vmatpush.bf16.msrb.mxu1 %v2214_v46 }
 0x295   :  { %1213 = vmatpush.bf16.msra.mxu2 %v2210_v42  ;;  %1227 = vmatpush.bf16.msra.mxu3 %v2216_v47 }
 0x298   :  { %1186 = vmatpush.bf16.msra.mxu0 %v2238_v62  ;;  %1200 = vmatpush.bf16.msrb.mxu1 %v2231_v54 }
 0x299   :  { %1214 = vmatpush.bf16.msra.mxu2 %v2233_v58  ;;  %1228 = vmatpush.bf16.msra.mxu3 %v2235_v59 }
 0x29c   :  { %1187 = vmatpush.bf16.msra.mxu0 %v2257_v11  ;;  %1201 = vmatpush.bf16.msrb.mxu1 %v2250_v3 }
 0x29d   :  { %1215 = vmatpush.bf16.msra.mxu2 %v2252_v7  ;;  %1229 = vmatpush.bf16.msra.mxu3 %v2254_v8 }
 0x2a0   :  { %1188 = vmatpush.bf16.msra.mxu0 %v2276_v25  ;;  %1202 = vmatpush.bf16.msrb.mxu1 %v2269_v16 }
 0x2a1   :  { %1216 = vmatpush.bf16.msra.mxu2 %v2271_v21  ;;  %1230 = vmatpush.bf16.msra.mxu3 %v2273_v22 }
 0x2a4   :  { %1189 = vmatpush.bf16.msra.mxu0 %v2292_v39  ;;  %1203 = vmatpush.bf16.msrb.mxu1 %v2288_v31 }
 0x2a5   :  { %1217 = vmatpush.bf16.msra.mxu2 %v2290_v37  ;;  %1231 = vmatpush.bf16.msra.mxu3 %v2295_v44 }
 0x2a8   :  { %1190 = vmatpush.bf16.msra.mxu0 %v2299_v48  ;;  %1204 = vmatpush.bf16.msrb.mxu1 %v2314_v60 }
 0x2a9   :  { %1218 = vmatpush.bf16.msra.mxu2 %v2317_v1  ;;  %1232 = vmatpush.bf16.msra.mxu3 %v2319_v2 }
 0x2ac   :  { %1191 = vmatpush.bf16.msra.mxu0 %v2303_v52  ;;  %1205 = vmatpush.bf16.msrb.mxu1 %v2341_v17 }
 0x2ad   :  { %1219 = vmatpush.bf16.msra.mxu2 %v2329_v10  ;;  %1233 = vmatpush.bf16.msra.mxu3 %v2331_v13 }
 0x30b   :  { %v975_v20 = vpop.f32.mrf.mxu0  ;;  %v989_v27 = vpop.f32.mrf.mxu1 }
 0x30c   :  { %v1022_v28 = vadd.f32 %v975_v20, %v204_v26  ;;  %v1023_v35 = vadd.f32 %v989_v27, %v253_v29 }
 0x30e   :  { %v1030_v9 = vmul.f32 0.5, %v1022_v28  ;;  %v1038_v32 = vmul.f32 0.5, %v1023_v35  ;;  %v3002_v28 = vld [vmem:[#allocation24_spill] sm:$0xff] }
 0x30f   :  { %v304_v35 = vadd.f32 %v3002_v28, %v2540_v14 }
 0x310   :  { %1971 = vtanh.f32 %v1030_v9  ;;  %v3003_v9 = vld [vmem:[#allocation25_spill] sm:$0xff] }
 0x311   :  { %1973 = vtanh.f32 %v1038_v32  ;;  %v353_v32 = vadd.f32 %v3003_v9, %v2554_v15 }
 0x312   :  { %v1003_v61 = vpop.f32.mrf.mxu2  ;;  %v1017_v40 = vpop.f32.mrf.mxu3 }
 0x313   :  { %v1024_v18 = vadd.f32 %v1003_v61, %v302_v6  ;;  %v977_v23 = vpop.f32.mrf.mxu0  ;;  %v991_v36 = vpop.f32.mrf.mxu1  ;;  %v1025_v20 = vadd.f32 %v1017_v40, %v351_v41 }
 0x314   :  { %v1026_v24 = vadd.f32 %v977_v23, %v206_v4  ;;  %v1027_v43 = vadd.f32 %v991_v36, %v255_v50 }
 0x315   :  { %1975 = vtanh.f32 %v1024_v18  ;;  %v1048_v50 = vmul.f32 0.5, %v1025_v20 }
 0x316   :  { %v1972_v12 = vpop.eup %1971  ;;  %v1031_v5 = vmul.f32 0.5, %v1026_v24  ;;  %v1039_v26 = vmul.f32 0.5, %v1027_v43 }
 0x317   :  { %v1974_v19 = vpop.eup %1973  ;;  %v1034_v29 = vadd.f32 1.0, %v1972_v12 }
 0x318   :  { %v1042_v27 = vadd.f32 1.0, %v1974_v19  ;;  %1977 = vtanh.f32 %v1031_v5 }
 0x319   :  { %v1036_v63 = vmul.f32 0.5, %v1034_v29  ;;  %1979 = vtanh.f32 %v1039_v26 }
 0x31a   :  { %v1044_v6 = vmul.f32 0.5, %v1042_v27  ;;  %v1005_v53 = vpop.f32.mrf.mxu2  ;;  %v1019_v4 = vpop.f32.mrf.mxu3 }
 0x31b   :  { %v1976_v57 = vpop.eup %1975  ;;  %v1028_v61 = vadd.f32 %v1005_v53, %v304_v35  ;;  %v1029_v18 = vadd.f32 %v1019_v4, %v353_v32 }
 0x31c   :  { %v1056_v23 = vmul.f32 %v1044_v6, %v2675_v45  ;;  %v1058_v40 = vmul.f32 %v1976_v57, %v1036_v63 }
 0x31d   :  { %1981 = vtanh.f32 %v1028_v61  ;;  %v1049_v36 = vmul.f32 0.5, %v1029_v18  ;;  %v3005_v18 = vld [vmem:[#allocation35_spill] sm:$0xff] }
 0x31e   :  { %v1978_v24 = vpop.eup %1977  ;;  %v2731_v43 = vadd.f32 %v1058_v40, %v1056_v23  ;;  %1983 = vtanh.f32 %v1048_v50  ;;  %v258_v23 = vadd.f32 %v3005_v18, %v2548_v56 }
 0x31f   :  { %v1980_v55 = vpop.eup %1979  ;;  %v1035_v41 = vadd.f32 1.0, %v1978_v24  ;;  %1985 = vtanh.f32 %v1049_v36 }
 0x320   :  { %v1043_v12 = vadd.f32 1.0, %v1980_v55  ;;  %1987 = vtanh.f32 %v2731_v43 }
 0x321   :  { %v1037_v5 = vmul.f32 0.5, %v1035_v41 }
 0x322   :  { %v1045_v26 = vmul.f32 0.5, %v1043_v12 }
 0x323   :  { %v1982_v19 = vpop.eup %1981 }
 0x324   :  { %v1057_v29 = vmul.f32 %v1045_v26, %v2679_v51  ;;  %v1059_v20 = vmul.f32 %v1982_v19, %v1037_v5  ;;  %v1984_v27 = vpop.eup %1983  ;;  %v3004_v51 = vld [vmem:[#allocation26_spill] sm:$0xff]  ;;  %v3006_v5 = vld [vmem:[#allocation28_spill] sm:$0xff] }
 0x325   :  { %v1986_v28 = vpop.eup %1985  ;;  %v1052_v35 = vadd.f32 1.0, %v1984_v27  ;;  %v209_v61 = vadd.f32 %v3004_v51, %v2526_v0  ;;  %v307_v26 = vadd.f32 %v3006_v5, %v2540_v14  ;;  %v3007_v19 = vld [vmem:[#allocation30_spill] sm:$0xff] }
 0x326   :  { %v2735_v45 = vadd.f32 %v1059_v20, %v1057_v29  ;;  %v1053_v9 = vadd.f32 1.0, %v1986_v28  ;;  %v1988_v32 = vpop.eup %1987  ;;  %v211_v29 = vadd.f32 %v3007_v19, %v2526_v0  ;;  %v3008_v20 = vld [vmem:[#allocation38_spill] sm:$0xff] }
 0x327   :  { %v1054_v63 = vmul.f32 0.5, %v1052_v35  ;;  %v260_v27 = vadd.f32 %v3008_v20, %v2548_v56 }
 0x328   :  { %1989 = vtanh.f32 %v2735_v45  ;;  %v1055_v6 = vmul.f32 0.5, %v1053_v9 }
 0x329   :  { %v1064_v4 = vmul.f32 %v1988_v32, %v1054_v63 }
 0x32e   :  { %v1990_v53 = vpop.eup %1989 }
 0x32f   :  { %v1065_v57 = vmul.f32 %v1990_v53, %v1055_v6 }
 0x331   :  { %v1074_v50 = vpack.c.bf16 %v1065_v57, %v1064_v4  ;;  %v3009_v4 = vld [vmem:[#allocation29_spill] sm:$0xff] }
 0x332   :  { %v356_v57 = vadd.f32 %v3009_v4, %v2554_v15 }
 0x333   :  { %1083 = vmatmul.bf16.vlgmr.msrb.gmra.mxu0 %v1074_v50  ;;  %1097 = vmatmul.bf16.vlgmr.msra.gmra.mxu1 %v1074_v50 }
 0x334   :  { %1111 = vmatmul.bf16.vlgmr.msrb.gmra.mxu2 %v1074_v50  ;;  %1125 = vmatmul.bf16.vlgmr.msrb.gmra.mxu3 %v1074_v50 }
 0x335   :  { %1293 = vmatpush.bf16.msrb.mxu0 %v2208_v38  ;;  %1307 = vmatpush.bf16.msra.mxu1 %v2202_v34 }
 0x336   :  { %1321 = vmatpush.bf16.msrb.mxu2 %v2195_v30  ;;  %1335 = vmatpush.bf16.msrb.mxu3 %v2197_v33 }
 0x339   :  { %1294 = vmatpush.bf16.msrb.mxu0 %v2218_v49  ;;  %1308 = vmatpush.bf16.msra.mxu1 %v2214_v46 }
 0x33a   :  { %1322 = vmatpush.bf16.msrb.mxu2 %v2210_v42  ;;  %1336 = vmatpush.bf16.msrb.mxu3 %v2216_v47 }
 0x33d   :  { %1295 = vmatpush.bf16.msrb.mxu0 %v2238_v62  ;;  %1309 = vmatpush.bf16.msra.mxu1 %v2231_v54 }
 0x33e   :  { %1323 = vmatpush.bf16.msrb.mxu2 %v2233_v58  ;;  %1337 = vmatpush.bf16.msrb.mxu3 %v2235_v59 }
 0x341   :  { %1296 = vmatpush.bf16.msrb.mxu0 %v2257_v11  ;;  %1310 = vmatpush.bf16.msra.mxu1 %v2250_v3 }
 0x342   :  { %1324 = vmatpush.bf16.msrb.mxu2 %v2252_v7  ;;  %1338 = vmatpush.bf16.msrb.mxu3 %v2254_v8 }
 0x345   :  { %1297 = vmatpush.bf16.msrb.mxu0 %v2276_v25  ;;  %1311 = vmatpush.bf16.msra.mxu1 %v2269_v16 }
 0x346   :  { %1325 = vmatpush.bf16.msrb.mxu2 %v2271_v21  ;;  %1339 = vmatpush.bf16.msrb.mxu3 %v2273_v22 }
 0x349   :  { %1298 = vmatpush.bf16.msrb.mxu0 %v2292_v39  ;;  %1312 = vmatpush.bf16.msra.mxu1 %v2288_v31 }
 0x34a   :  { %1326 = vmatpush.bf16.msrb.mxu2 %v2290_v37  ;;  %1340 = vmatpush.bf16.msrb.mxu3 %v2295_v44 }
 0x34d   :  { %1299 = vmatpush.bf16.msrb.mxu0 %v2299_v48  ;;  %1313 = vmatpush.bf16.msra.mxu1 %v2314_v60 }
 0x34e   :  { %1327 = vmatpush.bf16.msrb.mxu2 %v2317_v1  ;;  %1341 = vmatpush.bf16.msrb.mxu3 %v2319_v2 }
 0x351   :  { %1300 = vmatpush.bf16.msrb.mxu0 %v2303_v52  ;;  %1314 = vmatpush.bf16.msra.mxu1 %v2341_v17 }
 0x352   :  { %1328 = vmatpush.bf16.msrb.mxu2 %v2329_v10  ;;  %1342 = vmatpush.bf16.msrb.mxu3 %v2331_v13 }
 0x3b0   :  { %v1084_v40 = vpop.f32.mrf.mxu0  ;;  %v1098_v36 = vpop.f32.mrf.mxu1 }
 0x3b1   :  { %v1131_v24 = vadd.f32 %v1084_v40, %v209_v61  ;;  %v1132_v55 = vadd.f32 %v1098_v36, %v258_v23 }
 0x3b3   :  { %v1139_v41 = vmul.f32 0.5, %v1131_v24  ;;  %v1147_v12 = vmul.f32 0.5, %v1132_v55  ;;  %v3010_v24 = vld [vmem:[#allocation32_spill] sm:$0xff] }
 0x3b4   :  { %v309_v55 = vadd.f32 %v3010_v24, %v2540_v14 }
 0x3b5   :  { %1991 = vtanh.f32 %v1139_v41  ;;  %v3011_v41 = vld [vmem:[#allocation33_spill] sm:$0xff] }
 0x3b6   :  { %1993 = vtanh.f32 %v1147_v12  ;;  %v358_v12 = vadd.f32 %v3011_v41, %v2554_v15 }
 0x3b7   :  { %v1112_v28 = vpop.f32.mrf.mxu2  ;;  %v1126_v35 = vpop.f32.mrf.mxu3 }
 0x3b8   :  { %v1133_v9 = vadd.f32 %v1112_v28, %v307_v26  ;;  %v1086_v32 = vpop.f32.mrf.mxu0  ;;  %v1100_v63 = vpop.f32.mrf.mxu1  ;;  %v1134_v40 = vadd.f32 %v1126_v35, %v356_v57 }
 0x3b9   :  { %v1135_v6 = vadd.f32 %v1086_v32, %v211_v29  ;;  %v1136_v53 = vadd.f32 %v1100_v63, %v260_v27 }
 0x3ba   :  { %1995 = vtanh.f32 %v1133_v9  ;;  %v1157_v27 = vmul.f32 0.5, %v1134_v40 }
 0x3bb   :  { %v1992_v50 = vpop.eup %1991  ;;  %v1140_v51 = vmul.f32 0.5, %v1135_v6  ;;  %v1148_v61 = vmul.f32 0.5, %v1136_v53 }
 0x3bc   :  { %v1994_v18 = vpop.eup %1993  ;;  %v1143_v23 = vadd.f32 1.0, %v1992_v50 }
 0x3bd   :  { %v1151_v36 = vadd.f32 1.0, %v1994_v18  ;;  %1997 = vtanh.f32 %v1140_v51 }
 0x3be   :  { %v1145_v5 = vmul.f32 0.5, %v1143_v23  ;;  %1999 = vtanh.f32 %v1148_v61 }
 0x3bf   :  { %v1153_v26 = vmul.f32 0.5, %v1151_v36  ;;  %v1114_v19 = vpop.f32.mrf.mxu2  ;;  %v1128_v29 = vpop.f32.mrf.mxu3 }
 0x3c0   :  { %v1996_v20 = vpop.eup %1995  ;;  %v1137_v28 = vadd.f32 %v1114_v19, %v309_v55  ;;  %v1138_v9 = vadd.f32 %v1128_v29, %v358_v12 }
 0x3c1   :  { %v1165_v32 = vmul.f32 %v1153_v26, %v2731_v43  ;;  %v1167_v35 = vmul.f32 %v1996_v20, %v1145_v5 }
 0x3c2   :  { %2001 = vtanh.f32 %v1137_v28  ;;  %v1158_v63 = vmul.f32 0.5, %v1138_v9  ;;  %v3019_v9 = vld [vmem:[#allocation41_spill] sm:$0xff] }
 0x3c3   :  { %v1998_v6 = vpop.eup %1997  ;;  %v2787_v53 = vadd.f32 %v1167_v35, %v1165_v32  ;;  %2003 = vtanh.f32 %v1157_v27  ;;  %v363_v32 = vadd.f32 %v3019_v9, %v2554_v15 }
 0x3c4   :  { %v2000_v4 = vpop.eup %1999  ;;  %v1144_v57 = vadd.f32 1.0, %v1998_v6  ;;  %2005 = vtanh.f32 %v1158_v63 }
 0x3c5   :  { %v1152_v50 = vadd.f32 1.0, %v2000_v4  ;;  %2007 = vtanh.f32 %v2787_v53 }
 0x3c6   :  { %v1146_v51 = vmul.f32 0.5, %v1144_v57 }
 0x3c7   :  { %v1154_v61 = vmul.f32 0.5, %v1152_v50 }
 0x3c8   :  { %v2002_v18 = vpop.eup %2001 }
 0x3c9   :  { %v1166_v23 = vmul.f32 %v1154_v61, %v2735_v45  ;;  %v1168_v40 = vmul.f32 %v2002_v18, %v1146_v51  ;;  %v2004_v36 = vpop.eup %2003  ;;  %v3018_v45 = vld [vmem:[#allocation40_spill] sm:$0xff] }
 0x3ca   :  { %v2006_v24 = vpop.eup %2005  ;;  %v1161_v55 = vadd.f32 1.0, %v2004_v36  ;;  %v314_v28 = vadd.f32 %v3018_v45, %v2540_v14  ;;  %v3025_v45 = vld [vmem:[#allocation45_spill] sm:$0xff] }
 0x3cb   :  { %v2791_v43 = vadd.f32 %v1168_v40, %v1166_v23  ;;  %v1162_v41 = vadd.f32 1.0, %v2006_v24  ;;  %v2008_v12 = vpop.eup %2007 }
 0x3cc   :  { %v1163_v5 = vmul.f32 0.5, %v1161_v55 }
 0x3cd   :  { %2009 = vtanh.f32 %v2791_v43  ;;  %v1164_v26 = vmul.f32 0.5, %v1162_v41 }
 0x3ce   :  { %v1173_v29 = vmul.f32 %v2008_v12, %v1163_v5 }
 0x3d3   :  { %v2010_v19 = vpop.eup %2009 }
 0x3d4   :  { %v1174_v20 = vmul.f32 %v2010_v19, %v1164_v26 }
 0x3d6   :  { %v1183_v27 = vpack.c.bf16 %v1174_v20, %v1173_v29 }
 0x3d8   :  { %1192 = vmatmul.bf16.vlgmr.msra.gmra.mxu0 %v1183_v27  ;;  %1206 = vmatmul.bf16.vlgmr.msrb.gmra.mxu1 %v1183_v27 }
 0x3d9   :  { %1220 = vmatmul.bf16.vlgmr.msra.gmra.mxu2 %v1183_v27  ;;  %1234 = vmatmul.bf16.vlgmr.msra.gmra.mxu3 %v1183_v27 }
 0x3da   :  { %1402 = vmatpush.bf16.msra.mxu0 %v2208_v38  ;;  %1416 = vmatpush.bf16.msrb.mxu1 %v2202_v34  ;;  %v3013_v34 = vld [vmem:[#allocation42_spill] sm:$0xff] }
 0x3db   :  { %1430 = vmatpush.bf16.msra.mxu2 %v2195_v30  ;;  %1444 = vmatpush.bf16.msra.mxu3 %v2197_v33  ;;  %v3012_v30 = vld [vmem:[#allocation34_spill] sm:$0xff]  ;;  %v263_v38 = vadd.f32 %v3013_v34, %v2548_v56 }
 0x3dc   :  { %v214_v33 = vadd.f32 %v3012_v30, %v2526_v0 }
 0x3de   :  { %1403 = vmatpush.bf16.msra.mxu0 %v2218_v49  ;;  %1417 = vmatpush.bf16.msrb.mxu1 %v2214_v46 }
 0x3df   :  { %1431 = vmatpush.bf16.msra.mxu2 %v2210_v42  ;;  %1445 = vmatpush.bf16.msra.mxu3 %v2216_v47 }
 0x3e2   :  { %1404 = vmatpush.bf16.msra.mxu0 %v2238_v62  ;;  %1418 = vmatpush.bf16.msrb.mxu1 %v2231_v54 }
 0x3e3   :  { %1432 = vmatpush.bf16.msra.mxu2 %v2233_v58  ;;  %1446 = vmatpush.bf16.msra.mxu3 %v2235_v59  ;;  %v3014_v59 = vld [vmem:[#allocation36_spill] sm:$0xff] }
 0x3e4   :  { %v312_v62 = vadd.f32 %v3014_v59, %v2540_v14 }
 0x3e6   :  { %1405 = vmatpush.bf16.msra.mxu0 %v2257_v11  ;;  %1419 = vmatpush.bf16.msrb.mxu1 %v2250_v3  ;;  %v3015_v3 = vld [vmem:[#allocation39_spill] sm:$0xff] }
 0x3e7   :  { %1433 = vmatpush.bf16.msra.mxu2 %v2252_v7  ;;  %1447 = vmatpush.bf16.msra.mxu3 %v2254_v8  ;;  %v216_v7 = vadd.f32 %v3015_v3, %v2526_v0  ;;  %v3016_v8 = vld [vmem:[#allocation46_spill] sm:$0xff] }
 0x3e8   :  { %v265_v11 = vadd.f32 %v3016_v8, %v2548_v56 }
 0x3ea   :  { %1406 = vmatpush.bf16.msra.mxu0 %v2276_v25  ;;  %1420 = vmatpush.bf16.msrb.mxu1 %v2269_v16 }
 0x3eb   :  { %1434 = vmatpush.bf16.msra.mxu2 %v2271_v21  ;;  %1448 = vmatpush.bf16.msra.mxu3 %v2273_v22 }
 0x3ee   :  { %1407 = vmatpush.bf16.msra.mxu0 %v2292_v39  ;;  %1421 = vmatpush.bf16.msrb.mxu1 %v2288_v31 }
 0x3ef   :  { %1435 = vmatpush.bf16.msra.mxu2 %v2290_v37  ;;  %1449 = vmatpush.bf16.msra.mxu3 %v2295_v44  ;;  %v3017_v44 = vld [vmem:[#allocation37_spill] sm:$0xff] }
 0x3f2   :  { %1408 = vmatpush.bf16.msra.mxu0 %v2299_v48  ;;  %1422 = vmatpush.bf16.msrb.mxu1 %v2314_v60  ;;  %v361_v48 = vadd.f32 %v3017_v44, %v2554_v15  ;;  %v3024_v44 = vld [vmem:[#allocation52_spill] sm:$0xff] }
 0x3f3   :  { %1436 = vmatpush.bf16.msra.mxu2 %v2317_v1  ;;  %1450 = vmatpush.bf16.msra.mxu3 %v2319_v2 }
 0x3f6   :  { %1409 = vmatpush.bf16.msra.mxu0 %v2303_v52  ;;  %1423 = vmatpush.bf16.msrb.mxu1 %v2341_v17 }
 0x3f7   :  { %1437 = vmatpush.bf16.msra.mxu2 %v2329_v10  ;;  %1451 = vmatpush.bf16.msra.mxu3 %v2331_v13 }
 0x455   :  { %v1193_v42 = vpop.f32.mrf.mxu0  ;;  %v1207_v46 = vpop.f32.mrf.mxu1 }
 0x456   :  { %v1240_v47 = vadd.f32 %v1193_v42, %v214_v33  ;;  %v1241_v49 = vadd.f32 %v1207_v46, %v263_v38 }
 0x458   :  { %v1248_v54 = vmul.f32 0.5, %v1240_v47  ;;  %v1256_v58 = vmul.f32 0.5, %v1241_v49 }
 0x45a   :  { %2011 = vtanh.f32 %v1248_v54 }
 0x45b   :  { %2013 = vtanh.f32 %v1256_v58 }
 0x45c   :  { %v1221_v16 = vpop.f32.mrf.mxu2  ;;  %v1235_v21 = vpop.f32.mrf.mxu3 }
 0x45d   :  { %v1242_v22 = vadd.f32 %v1221_v16, %v312_v62  ;;  %v1195_v25 = vpop.f32.mrf.mxu0  ;;  %v1209_v31 = vpop.f32.mrf.mxu1  ;;  %v1243_v13 = vadd.f32 %v1235_v21, %v361_v48  ;;  %v3021_v62 = vld [vmem:[#allocation49_spill] sm:$0xff]  ;;  %v270_v48 = vadd.f32 %v3024_v44, %v2548_v56  ;;  %v1898_v44 = vld [vmem:[%s2929_s4 + $0x10] sm:$0xff] }
 0x45e   :  { %v1244_v37 = vadd.f32 %v1195_v25, %v216_v7  ;;  %v1245_v39 = vadd.f32 %v1209_v31, %v265_v11  ;;  %v268_v3 = vadd.f32 %v3021_v62, %v2548_v56  ;;  %v3022_v25 = vld [vmem:[#allocation44_spill] sm:$0xff] }
 0x45f   :  { %2015 = vtanh.f32 %v1242_v22  ;;  %v1266_v50 = vmul.f32 0.5, %v1243_v13  ;;  %v317_v31 = vadd.f32 %v3022_v25, %v2540_v14  ;;  %v1902_v25 = vld [vmem:[%s2929_s4 + $0x30] sm:$0xff] }
 0x460   :  { %v2012_v52 = vpop.eup %2011  ;;  %v1249_v60 = vmul.f32 0.5, %v1244_v37  ;;  %v1257_v1 = vmul.f32 0.5, %v1245_v39  ;;  %v3023_v37 = vld [vmem:[#allocation47_spill] sm:$0xff] }
 0x461   :  { %v2014_v2 = vpop.eup %2013  ;;  %v1252_v10 = vadd.f32 1.0, %v2012_v52  ;;  %v221_v39 = vadd.f32 %v3023_v37, %v2526_v0  ;;  %v1900_v37 = vld [vmem:[%s2929_s4 + $0x20] sm:$0xff] }
 0x462   :  { %v1260_v17 = vadd.f32 1.0, %v2014_v2  ;;  %2017 = vtanh.f32 %v1249_v60 }
 0x463   :  { %v1254_v35 = vmul.f32 0.5, %v1252_v10  ;;  %2019 = vtanh.f32 %v1257_v1 }
 0x464   :  { %v1262_v63 = vmul.f32 0.5, %v1260_v17  ;;  %v1223_v6 = vpop.f32.mrf.mxu2  ;;  %v1237_v4 = vpop.f32.mrf.mxu3 }
 0x465   :  { %v2016_v57 = vpop.eup %2015  ;;  %v1246_v51 = vadd.f32 %v1223_v6, %v314_v28  ;;  %v1247_v61 = vadd.f32 %v1237_v4, %v363_v32  ;;  %v366_v28 = vadd.f32 %v3025_v45, %v2554_v15 }
 0x466   :  { %v1274_v18 = vmul.f32 %v1262_v63, %v2787_v53  ;;  %v1276_v23 = vmul.f32 %v2016_v57, %v1254_v35 }
 0x467   :  { %2021 = vtanh.f32 %v1246_v51  ;;  %v1267_v40 = vmul.f32 0.5, %v1247_v61  ;;  %v3027_v61 = vld [vmem:[#allocation50_spill] sm:$0xff] }
 0x468   :  { %v2018_v36 = vpop.eup %2017  ;;  %v2843_v24 = vadd.f32 %v1276_v23, %v1274_v18  ;;  %2023 = vtanh.f32 %v1266_v50  ;;  %v3026_v50 = vld [vmem:[#allocation48_spill] sm:$0xff]  ;;  %v368_v18 = vadd.f32 %v3027_v61, %v2554_v15 }
 0x469   :  { %v2020_v55 = vpop.eup %2019  ;;  %v1253_v41 = vadd.f32 1.0, %v2018_v36  ;;  %2025 = vtanh.f32 %v1267_v40  ;;  %v319_v51 = vadd.f32 %v3026_v50, %v2540_v14 }
 0x46a   :  { %v1261_v12 = vadd.f32 1.0, %v2020_v55  ;;  %2027 = vtanh.f32 %v2843_v24 }
 0x46b   :  { %v1255_v5 = vmul.f32 0.5, %v1253_v41 }
 0x46c   :  { %v1263_v26 = vmul.f32 0.5, %v1261_v12 }
 0x46d   :  { %v2022_v19 = vpop.eup %2021 }
 0x46e   :  { %v1275_v29 = vmul.f32 %v1263_v26, %v2791_v43  ;;  %v1277_v20 = vmul.f32 %v2022_v19, %v1255_v5  ;;  %v2024_v27 = vpop.eup %2023  ;;  %v3020_v43 = vld [vmem:[#allocation43_spill] sm:$0xff] }
 0x46f   :  { %v2026_v30 = vpop.eup %2025  ;;  %v1270_v33 = vadd.f32 1.0, %v2024_v27  ;;  %v219_v59 = vadd.f32 %v3020_v43, %v2526_v0 }
 0x470   :  { %v2847_v53 = vadd.f32 %v1277_v20, %v1275_v29  ;;  %v1271_v34 = vadd.f32 1.0, %v2026_v30  ;;  %v2028_v38 = vpop.eup %2027 }
 0x471   :  { %v1272_v42 = vmul.f32 0.5, %v1270_v33 }
 0x472   :  { %2029 = vtanh.f32 %v2847_v53  ;;  %v1273_v46 = vmul.f32 0.5, %v1271_v34 }
 0x473   :  { %v1282_v49 = vmul.f32 %v2028_v38, %v1272_v42 }
 0x478   :  { %v2030_v47 = vpop.eup %2029 }
 0x479   :  { %v1283_v54 = vmul.f32 %v2030_v47, %v1273_v46 }
 0x47b   :  { %v1292_v58 = vpack.c.bf16 %v1283_v54, %v1282_v49 }
 0x47d   :  { %1301 = vmatmul.bf16.vlgmr.msrb.gmra.mxu0 %v1292_v58  ;;  %1315 = vmatmul.bf16.vlgmr.msra.gmra.mxu1 %v1292_v58 }
 0x47e   :  { %1329 = vmatmul.bf16.vlgmr.msrb.gmra.mxu2 %v1292_v58  ;;  %1343 = vmatmul.bf16.vlgmr.msrb.gmra.mxu3 %v1292_v58 }
 0x4fa   :  { %v1302_v7 = vpop.f32.mrf.mxu0  ;;  %v1316_v8 = vpop.f32.mrf.mxu1 }
 0x4fb   :  { %v1349_v11 = vadd.f32 %v1302_v7, %v219_v59  ;;  %v1350_v16 = vadd.f32 %v1316_v8, %v268_v3 }
 0x4fd   :  { %v1357_v21 = vmul.f32 0.5, %v1349_v11  ;;  %v1365_v22 = vmul.f32 0.5, %v1350_v16 }
 0x4ff   :  { %2031 = vtanh.f32 %v1357_v21 }
 0x500   :  { %2033 = vtanh.f32 %v1365_v22 }
 0x501   :  { %v1330_v52 = vpop.f32.mrf.mxu2  ;;  %v1344_v60 = vpop.f32.mrf.mxu3 }
 0x502   :  { %v1351_v1 = vadd.f32 %v1330_v52, %v317_v31  ;;  %v1304_v2 = vpop.f32.mrf.mxu0  ;;  %v1318_v10 = vpop.f32.mrf.mxu1  ;;  %v1352_v4 = vadd.f32 %v1344_v60, %v366_v28  ;;  %v1901_v31 = vld [vmem:[%s2929_s4 + $0x28] sm:$0xff] }
 0x503   :  { %v1353_v13 = vadd.f32 %v1304_v2, %v221_v39  ;;  %v1354_v17 = vadd.f32 %v1318_v10, %v270_v48  ;;  %v1899_v39 = vld [vmem:[%s2929_s4 + $0x18] sm:$0xff]  ;;  %v3028_v48 = vld [vmem:[#allocation6_spill] sm:$0xff]  ;;  %v3029_v60 = vld [vmem:[#allocation55_spill] sm:$0xff] }
 0x504   :  { %2035 = vtanh.f32 %v1351_v1  ;;  %v1375_v12 = vmul.f32 0.5, %v1352_v4  ;;  %v224_v52 = vadd.f32 %v3028_v48, %v2526_v0  ;;  %v273_v1 = vadd.f32 %v3029_v60, %v2548_v56  ;;  %v1897_v2 = vld [vmem:[%s2929_s4 + $0x8] sm:$0xff] }
 0x505   :  { %v2032_v9 = vpop.eup %2031  ;;  %v1358_v32 = vmul.f32 0.5, %v1353_v13  ;;  %v1366_v35 = vmul.f32 0.5, %v1354_v17 }
 0x506   :  { %v2034_v63 = vpop.eup %2033  ;;  %v1361_v6 = vadd.f32 1.0, %v2032_v9 }
 0x507   :  { %v1369_v57 = vadd.f32 1.0, %v2034_v63  ;;  %2037 = vtanh.f32 %v1358_v32  ;;  %v1896_v32 = vld [vmem:[%s2929_s4] sm:$0xff] }
 0x508   :  { %v1363_v23 = vmul.f32 0.5, %v1361_v6  ;;  %2039 = vtanh.f32 %v1366_v35  ;;  %v3030_v35 = vld [vmem:[#allocation51_spill] sm:$0xff]  ;;  %v3031_v6 = vld [vmem:[#allocation53_spill] sm:$0xff] }
 0x509   :  { %v1371_v40 = vmul.f32 0.5, %v1369_v57  ;;  %v1332_v36 = vpop.f32.mrf.mxu2  ;;  %v1346_v55 = vpop.f32.mrf.mxu3  ;;  %v322_v63 = vadd.f32 %v3030_v35, %v2540_v14  ;;  %v371_v4 = vadd.f32 %v3031_v6, %v2554_v15  ;;  %v3032_v57 = vld [vmem:[#allocation7_spill] sm:$0xff] }
 0x50a   :  { %v2036_v41 = vpop.eup %2035  ;;  %v1355_v5 = vadd.f32 %v1332_v36, %v319_v51  ;;  %v1356_v26 = vadd.f32 %v1346_v55, %v368_v18  ;;  %v226_v50 = vadd.f32 %v3032_v57, %v2526_v0  ;;  %v3033_v51 = vld [vmem:[#allocation57_spill] sm:$0xff] }
 0x50b   :  { %v1383_v19 = vmul.f32 %v1371_v40, %v2843_v24  ;;  %v1385_v29 = vmul.f32 %v2036_v41, %v1363_v23  ;;  %v275_v61 = vadd.f32 %v3033_v51, %v2548_v56  ;;  %v3034_v56 = vld [vmem:[#allocation54_spill] sm:$0xff] }
 0x50c   :  { %2041 = vtanh.f32 %v1355_v5  ;;  %v1376_v20 = vmul.f32 0.5, %v1356_v26 }
 0x50d   :  { %v2038_v27 = vpop.eup %2037  ;;  %v2867_v30 = vadd.f32 %v1385_v29, %v1383_v19  ;;  %2043 = vtanh.f32 %v1375_v12 }
 0x50e   :  { %v2040_v33 = vpop.eup %2039  ;;  %v1362_v34 = vadd.f32 1.0, %v2038_v27  ;;  %2045 = vtanh.f32 %v1376_v20 }
 0x50f   :  { %v1370_v38 = vadd.f32 1.0, %v2040_v33  ;;  %2047 = vtanh.f32 %v2867_v30 }
 0x510   :  { %v1364_v42 = vmul.f32 0.5, %v1362_v34  ;;  %v324_v34 = vadd.f32 %v3034_v56, %v2540_v14 }
 0x511   :  { %v1372_v46 = vmul.f32 0.5, %v1370_v38  ;;  %v3035_v38 = vld [vmem:[#allocation56_spill] sm:$0xff] }
 0x512   :  { %v2042_v47 = vpop.eup %2041 }
 0x513   :  { %v1384_v49 = vmul.f32 %v1372_v46, %v2847_v53  ;;  %v1386_v54 = vmul.f32 %v2042_v47, %v1364_v42  ;;  %v2044_v58 = vpop.eup %2043  ;;  %v1903_v53 = vld [vmem:[%s2929_s4 + $0x38] sm:$0xff]  ;;  %v373_v42 = vadd.f32 %v3035_v38, %v2554_v15 }
 0x514   :  { %v2046_v43 = vpop.eup %2045  ;;  %v1379_v59 = vadd.f32 1.0, %v2044_v58  ;;  %1571 = vmatpush.bf16.msrb.mxu0 %v1903_v53 }
 0x515   :  { %v2871_v24 = vadd.f32 %v1386_v54, %v1384_v49  ;;  %v1380_v62 = vadd.f32 1.0, %v2046_v43  ;;  %v2048_v3 = vpop.eup %2047 }
 0x516   :  { %v1381_v7 = vmul.f32 0.5, %v1379_v59 }
 0x517   :  { %2049 = vtanh.f32 %v2871_v24  ;;  %v1382_v8 = vmul.f32 0.5, %v1380_v62 }
 0x518   :  { %v1391_v16 = vmul.f32 %v2048_v3, %v1381_v7  ;;  %1572 = vmatpush.bf16.msrb.mxu0 %v1902_v25 }
 0x51c   :  { %1573 = vmatpush.bf16.msrb.mxu0 %v1901_v31 }
 0x51d   :  { %v2050_v11 = vpop.eup %2049 }
 0x51e   :  { %v1392_v21 = vmul.f32 %v2050_v11, %v1382_v8 }
 0x520   :  { %v1401_v22 = vpack.c.bf16 %v1392_v21, %v1391_v16  ;;  %1574 = vmatpush.bf16.msrb.mxu0 %v1900_v37 }
 0x522   :  { %1410 = vmatmul.bf16.vlgmr.msra.gmra.mxu0 %v1401_v22  ;;  %1424 = vmatmul.bf16.vlgmr.msrb.gmra.mxu1 %v1401_v22 }
 0x523   :  { %1438 = vmatmul.bf16.vlgmr.msra.gmra.mxu2 %v1401_v22  ;;  %1452 = vmatmul.bf16.vlgmr.msra.gmra.mxu3 %v1401_v22 }
 0x524   :  { %1575 = vmatpush.bf16.msrb.mxu0 %v1899_v39 }
 0x528   :  { %1576 = vmatpush.bf16.msrb.mxu0 %v1898_v44 }
 0x52c   :  { %1577 = vmatpush.bf16.msrb.mxu0 %v1897_v2 }
 0x530   :  { %1578 = vmatpush.bf16.msrb.mxu0 %v1896_v32 }
 0x59f   :  { %v1411_v10 = vpop.f32.mrf.mxu0  ;;  %v1425_v13 = vpop.f32.mrf.mxu1 }
 0x5a0   :  { %v1458_v17 = vadd.f32 %v1411_v10, %v224_v52  ;;  %v1459_v45 = vadd.f32 %v1425_v13, %v273_v1 }
 0x5a2   :  { %v1466_v28 = vmul.f32 0.5, %v1458_v17  ;;  %v1474_v9 = vmul.f32 0.5, %v1459_v45  ;;  %v1910_v45 = vld [vmem:[%s2930_s5] ss:$0 sm:$0xff] }
 0x5a4   :  { %2051 = vtanh.f32 %v1466_v28 }
 0x5a5   :  { %2053 = vtanh.f32 %v1474_v9 }
 0x5a6   :  { %v1439_v18 = vpop.f32.mrf.mxu2  ;;  %v1453_v23 = vpop.f32.mrf.mxu3 }
 0x5a7   :  { %v1460_v40 = vadd.f32 %v1439_v18, %v322_v63  ;;  %v1461_v36 = vadd.f32 %v1453_v23, %v371_v4  ;;  %v1413_v55 = vpop.f32.mrf.mxu0  ;;  %v1427_v41 = vpop.f32.mrf.mxu1 }
 0x5a8   :  { %v1462_v12 = vadd.f32 %v1413_v55, %v226_v50  ;;  %v1463_v5 = vadd.f32 %v1427_v41, %v275_v61 }
 0x5a9   :  { %2055 = vtanh.f32 %v1460_v40  ;;  %v1484_v26 = vmul.f32 0.5, %v1461_v36 }
 0x5aa   :  { %v2052_v19 = vpop.eup %2051  ;;  %v1467_v29 = vmul.f32 0.5, %v1462_v12  ;;  %v1475_v20 = vmul.f32 0.5, %v1463_v5 }
 0x5ab   :  { %v2054_v27 = vpop.eup %2053  ;;  %v1470_v33 = vadd.f32 1.0, %v2052_v19  ;;  %2057 = vtanh.f32 %v1484_v26 }
 0x5ac   :  { %v1478_v0 = vadd.f32 1.0, %v2054_v27  ;;  %2059 = vtanh.f32 %v1467_v29 }
 0x5ad   :  { %v1472_v46 = vmul.f32 0.5, %v1470_v33  ;;  %2061 = vtanh.f32 %v1475_v20 }
 0x5ae   :  { %v1480_v47 = vmul.f32 0.5, %v1478_v0  ;;  %v1441_v49 = vpop.f32.mrf.mxu2  ;;  %v1455_v54 = vpop.f32.mrf.mxu3 }
 0x5af   :  { %v2056_v58 = vpop.eup %2055  ;;  %v1464_v43 = vadd.f32 %v1441_v49, %v324_v34  ;;  %v1465_v59 = vadd.f32 %v1455_v54, %v373_v42 }
 0x5b0   :  { %v1492_v62 = vmul.f32 %v1480_v47, %v2867_v30  ;;  %v1494_v3 = vmul.f32 %v2056_v58, %v1472_v46 }
 0x5b1   :  { %v2058_v7 = vpop.eup %2057  ;;  %2063 = vtanh.f32 %v1464_v43  ;;  %v1485_v8 = vmul.f32 0.5, %v1465_v59 }
 0x5b2   :  { %v2060_v11 = vpop.eup %2059  ;;  %v1496_v16 = vadd.f32 %v1494_v3, %v1492_v62  ;;  %v1488_v22 = vadd.f32 1.0, %v2058_v7 }
 0x5b3   :  { %v2062_v14 = vpop.eup %2061  ;;  %v1471_v21 = vadd.f32 1.0, %v2060_v11  ;;  %2065 = vtanh.f32 %v1485_v8 }
 0x5b4   :  { %2067 = vtanh.f32 %v1496_v16  ;;  %v1479_v15 = vadd.f32 1.0, %v2062_v14  ;;  %v1490_v30 = vmul.f32 0.5, %v1488_v22 }
 0x5b5   :  { %v1473_v53 = vmul.f32 0.5, %v1471_v21 }
 0x5b6   :  { %v1481_v25 = vmul.f32 0.5, %v1479_v15 }
 0x5b7   :  { %v2064_v31 = vpop.eup %2063 }
 0x5b8   :  { %v1493_v37 = vmul.f32 %v1481_v25, %v2871_v24  ;;  %v1495_v39 = vmul.f32 %v2064_v31, %v1473_v53 }
 0x5b9   :  { %v2066_v44 = vpop.eup %2065 }
 0x5ba   :  { %v2068_v48 = vpop.eup %2067  ;;  %v1497_v52 = vadd.f32 %v1495_v39, %v1493_v37  ;;  %v1489_v1 = vadd.f32 1.0, %v2066_v44 }
 0x5bb   :  { %v1500_v60 = vmul.f32 %v2068_v48, %v1490_v30 }
 0x5bc   :  { %2069 = vtanh.f32 %v1497_v52  ;;  %v1491_v2 = vmul.f32 0.5, %v1489_v1 }
 0x5c2   :  { %v2070_v10 = vpop.eup %2069 }
 0x5c3   :  { %v1501_v13 = vmul.f32 %v2070_v10, %v1491_v2 }
 0x5c5   :  { %v1502_v17 = vpack.c.bf16 %v1501_v13, %v1500_v60 }
 0x5c7   :  { %1579 = vmatmul.bf16.vlgmr.msrb.gmra.mxu0 %v1502_v17 }
 0x644   :  { %v1580_v28 = vpop.f32.mrf.mxu0 }
 0x645   :  { %v1581_v9 = vadd.f32 %v1910_v45, %v1580_v28 }
 0x647   :  { %1585 = vst [vmem:[%s2931_s6] sm:$0xff] %v1581_v9 }
 0x64c   :  { %v1582_v24 = vpop.f32.mrf.mxu0 }
 0x64d   :  { %v1583_v32 = vadd.f32 %v1910_v45, %v1582_v24 }
 0x64f   :  { %1586 = vst [vmem:[%s2931_s6 + $0x8] sm:$0xff] %v1583_v32 }
 0x650   :  { %1591 = vsyncpa [#allocation4], 1 }

</bundles_post_ra>
